<compile_context>
chip_gen: v7x
topology: tpu7x:2x2x1
jax: 0.10.0
libtpu: 0.0.40
codegen_flags: <defaults>
</compile_context>

<pallas_src>
import jax
import jax.numpy as jnp
import numpy as np
from jax.experimental import pallas as pl
from jax.experimental.pallas import tpu as pltpu


def _out_size(s):
    # Conv2d(kernel=3, stride=2, padding=1) output size.
    return (s - 1) // 2 + 1


def _interp_1d(size_out, size_in):
    """align_corners=True bilinear source indices / fractions (numpy, trace time)."""
    if size_out == 1:
        src = np.zeros((1,), np.float64)
    else:
        src = np.arange(size_out, dtype=np.float64) * (size_in - 1) / (size_out - 1)
    i0 = np.clip(np.floor(src).astype(np.int64), 0, max(size_in - 2, 0))
    i1 = np.minimum(i0 + 1, size_in - 1)
    frac = (src - i0).astype(np.float32)
    return i0, i1, frac


def _runs(idx):
    """Monotone index vector -> [(value, count), ...]  (static, trace time)."""
    runs, start, n = [], 0, len(idx)
    while start < n:
        v, end = int(idx[start]), start
        while end < n and int(idx[end]) == v:
            end += 1
        runs.append((v, end - start))
        start = end
    return runs


def _vmem_capacity_bytes():
    try:
        cap = getattr(pltpu.get_tpu_info(), "vmem_capacity_bytes", None)
        if cap:
            return int(cap)
    except Exception:
        pass
    return 64 * 2**20  # conservative default (v7x per-TensorCore)


def _pick_c_tile(C, H, W, budget_bytes):
    """Largest legal channel tile (C itself, or a multiple of 128 dividing C)
    whose per-grid-step VMEM footprint fits the budget.  Raises if none fits."""
    H1, W1 = _out_size(H), _out_size(W)
    H2, W2 = _out_size(H1), _out_size(W1)
    pad_elems = (2 * H1 + 2) * (2 * W1 + 2) + (2 * H2 + 2) * (2 * W2 + 2)
    # 2x double-buffered input + 2x output blocks + pad scratches + ~7 live f32 temps.
    per_chan_bytes = (4 * H * W + pad_elems + 7 * H * W) * 4
    cands = sorted({C} | {d for d in range(128, C, 128) if C % d == 0})
    fitting = [d for d in cands if d * per_chan_bytes <= budget_bytes]
    if not fitting:
        # TODO(synk): add H-row spatial tiling (with 3x3/s2 conv + interp halos) so
        # large images fit VMEM; until then fail loudly instead of silently OOMing.
        raise ValueError(
            f"GE_4_theo Pallas kernel: no channel tile of C={C} fits the "
            f"{budget_bytes // 2**20} MiB VMEM budget at spatial size {H}x{W}.")
    return max(fitting)


def _make_kernel(H, W, H1, W1, H2, W2, CT, row_terms, col_runs_lo, col_runs_hi):
    Hp1, Wp1 = 2 * H1 + 2, 2 * W1 + 2
    Hp2, Wp2 = 2 * H2 + 2, 2 * W2 + 2

    def zero_border(pad_ref, h_in, w_in, hp, wp):
        # Border-only zeroing: the interior is overwritten right after, so a
        # full-buffer fill would be pure wasted store traffic.
        pad_ref[pl.ds(0, 1), :, :] = jnp.zeros((1, wp, CT), jnp.float32)
        pad_ref[pl.ds(h_in + 1, hp - h_in - 1), :, :] = (
            jnp.zeros((hp - h_in - 1, wp, CT), jnp.float32))
        pad_ref[:, pl.ds(0, 1), :] = jnp.zeros((hp, 1, CT), jnp.float32)
        pad_ref[:, pl.ds(w_in + 1, wp - w_in - 1), :] = (
            jnp.zeros((hp, wp - w_in - 1, CT), jnp.float32))

    def dwconv_s2(pad_ref, ho, wo, w_all, bias):
        """3x3 depthwise conv, stride 2, pad 1, on a zero-padded VMEM scratch.

        pad_ref: (2*ho+2, 2*wo+2, CT) zero-bordered input.
        w_all:   (9, CT) per-channel taps, k = ki*3 + kj.
        bias:    (1, CT).
        Returns (ho, wo, CT) f32.
        """
        # Two sublane-strided loads (even / odd padded columns); the kj=2 taps
        # are a one-column shift of the even plane (saves a third strided gather).
        even = pad_ref[:, pl.ds(0, wo + 1, stride=2), :]   # padded cols 0,2,...,2*wo
        odd = pad_ref[:, pl.ds(1, wo, stride=2), :]        # padded cols 1,3,...,2*wo-1
        evr = even.reshape(ho + 1, 2, wo + 1, CT)          # leading-dim split (layout no-op)
        odr = odd.reshape(ho + 1, 2, wo, CT)
        acc = None
        for ki in range(3):
            if ki == 0:
                e, o = evr[0:ho, 0], odr[0:ho, 0]          # padded rows 2o
            elif ki == 1:
                e, o = evr[0:ho, 1], odr[0:ho, 1]          # padded rows 2o+1
            else:
                e, o = evr[1:ho + 1, 0], odr[1:ho + 1, 0]  # padded rows 2o+2
            term = (e[:, 0:wo, :] * w_all[ki * 3 + 0][None, None, :]
                    + o * w_all[ki * 3 + 1][None, None, :]
                    + e[:, 1:wo + 1, :] * w_all[ki * 3 + 2][None, None, :])
            acc = term if acc is None else acc + term
        return acc + bias

    def gather_cols(t, runs):
        # Static "gather" along the sublane (W2) axis: concat of broadcast runs.
        pieces = [jnp.broadcast_to(t[:, v:v + 1, :], (t.shape[0], cnt, CT))
                  for v, cnt in runs]
        return pieces[0] if len(pieces) == 1 else jnp.concatenate(pieces, axis=1)

    def kernel(x_ref, w1_ref, b1_ref, w2_ref, b2_ref, fcol_ref, o_ref,
               pad1_ref, pad2_ref):
        x = x_ref[0]                                           # (H, W, CT)

        # ---- gather: conv(s2) -> ReLU -> conv(s2) ----------------------------
        zero_border(pad1_ref, H, W, Hp1, Wp1)
        pad1_ref[pl.ds(1, H), pl.ds(1, W), :] = x
        y1 = dwconv_s2(pad1_ref, H1, W1, w1_ref[...], b1_ref[...])
        y1 = jnp.maximum(y1, 0.0)

        zero_border(pad2_ref, H1, W1, Hp2, Wp2)
        pad2_ref[pl.ds(1, H1), pl.ds(1, W1), :] = y1
        y2 = dwconv_s2(pad2_ref, H2, W2, w2_ref[...], b2_ref[...])   # (H2, W2, CT)

        # ---- bilinear upsample (align_corners=True), lane-preserving ---------
        # Rows: statically unrolled 2-tap blends (compile-time scalar weights).
        rows = []
        for (i0, a0, i1, a1) in row_terms:
            if a1 == 0.0:
                r = y2[i0] if a0 == 1.0 else y2[i0] * a0
            elif a0 == 0.0:
                r = y2[i1] if a1 == 1.0 else y2[i1] * a1
            else:
                r = y2[i0] * a0 + y2[i1] * a1
            rows.append(r)
        t3 = jnp.stack(rows, axis=0)                           # (H, W2, CT)

        # Columns: floor/ceil planes from static broadcast runs + one FMA with
        # the per-column fraction (no MXU matmul, no lane<->sublane transposes).
        lo = gather_cols(t3, col_runs_lo)                      # (H, W, CT)
        hi = gather_cols(t3, col_runs_hi)                      # (H, W, CT)
        up = lo + (hi - lo) * fcol_ref[...]                    # fcol: (1, W, 1)

        # ---- gate & write (lane-dense store, sigmoid on EUP) -----------------
        o_ref[0] = (jax.nn.sigmoid(up) * x).astype(o_ref.dtype)

    return kernel


def ge4_theo_forward_nhwc(x_nhwc, w1, b1, w2, b2):
    """Channel-last entry point (no layout transposes).

    x_nhwc: (N, H, W, C); w*: (C, 1, 3, 3) (PyTorch depthwise layout); b*: (C,).
    """
    N, H, W, C = x_nhwc.shape
    H1, W1 = _out_size(H), _out_size(W)
    H2, W2 = _out_size(H1), _out_size(W1)

    # Generation-aware VMEM sizing (v7x: 64 MiB/TC, v5e/v6e: 128 MiB).
    vmem_cap = _vmem_capacity_bytes()
    vmem_limit = min((vmem_cap * 7) // 10, 100 * 2**20)
    tile_budget = min((vmem_cap * 3) // 8, 64 * 2**20)
    CT = _pick_c_tile(C, H, W, tile_budget)
    n_ct = C // CT

    def prep_w(w):  # (C,1,3,3) -> (9, C), tap index k = ki*3 + kj
        return jnp.transpose(jnp.reshape(w[:, 0], (C, 9)), (1, 0)).astype(jnp.float32)

    w1k, w2k = prep_w(w1), prep_w(w2)
    b1k = b1.reshape(1, C).astype(jnp.float32)
    b2k = b2.reshape(1, C).astype(jnp.float32)

    row_i0, row_i1, row_f = _interp_1d(H, H2)
    col_j0, col_j1, col_f = _interp_1d(W, W2)
    row_terms = [(int(row_i0[i]), float(1.0 - row_f[i]), int(row_i1[i]), float(row_f[i]))
                 for i in range(H)]
    fcol = jnp.asarray(col_f, jnp.float32).reshape(1, W, 1)

    kernel = _make_kernel(H, W, H1, W1, H2, W2, CT, row_terms,
                          _runs(col_j0), _runs(col_j1))

    Hp1, Wp1 = 2 * H1 + 2, 2 * W1 + 2
    Hp2, Wp2 = 2 * H2 + 2, 2 * W2 + 2

    return pl.pallas_call(
        kernel,
        out_shape=jax.ShapeDtypeStruct((N, H, W, C), x_nhwc.dtype),
        grid=(N, n_ct),
        in_specs=[
            pl.BlockSpec((1, H, W, CT), lambda n, c: (n, 0, 0, c)),   # x
            pl.BlockSpec((9, CT), lambda n, c: (0, c)),               # conv1 taps
            pl.BlockSpec((1, CT), lambda n, c: (0, c)),               # conv1 bias
            pl.BlockSpec((9, CT), lambda n, c: (0, c)),               # conv2 taps
            pl.BlockSpec((1, CT), lambda n, c: (0, c)),               # conv2 bias
            pl.BlockSpec((1, W, 1), lambda n, c: (0, 0, 0)),          # column fractions
        ],
        out_specs=pl.BlockSpec((1, H, W, CT), lambda n, c: (n, 0, 0, c)),
        scratch_shapes=[
            pltpu.VMEM((Hp1, Wp1, CT), jnp.float32),   # zero-bordered conv1 input
            pltpu.VMEM((Hp2, Wp2, CT), jnp.float32),   # zero-bordered conv2 input
        ],
        compiler_params=pltpu.CompilerParams(
            dimension_semantics=("parallel", "parallel"),
            vmem_limit_bytes=int(vmem_limit),
        ),
    )(x_nhwc.astype(jnp.float32), w1k, b1k, w2k, b2k, fcol)


def ge4_theo_forward(x, w1, b1, w2, b2):
    """NCHW boundary matching the PyTorch module.  x: (N, C, H, W).

    NOTE: the two transposes below are full extra HBM passes over x / out; if the
    surrounding model keeps activations channel-last, call ge4_theo_forward_nhwc
    directly and skip them (~3x less end-to-end HBM traffic for this mem-bound op).
    """
    x_nhwc = jnp.transpose(x, (0, 2, 3, 1))
    out_nhwc = ge4_theo_forward_nhwc(x_nhwc, w1, b1, w2, b2)
    return jnp.transpose(out_nhwc, (0, 3, 1, 2))


def _ref_forward(x, w1, b1, w2, b2):
    """Independent pure-JAX reference (lax conv + gather-based bilinear)."""
    C = x.shape[1]

    def dwconv(y, w, b):
        out = jax.lax.conv_general_dilated(
            y, w, window_strides=(2, 2), padding=((1, 1), (1, 1)),
            dimension_numbers=('NCHW', 'OIHW', 'NCHW'),
            feature_group_count=C)
        return out + b.reshape(1, C, 1, 1)

    y = jnp.maximum(dwconv(x, w1, b1), 0.0)
    y = dwconv(y, w2, b2)
    H, W = x.shape[2], x.shape[3]
    h2, w2s = y.shape[2], y.shape[3]

    def axis_coords(so, si):
        src = jnp.arange(so) * (si - 1) / (so - 1)
        i0 = jnp.clip(jnp.floor(src).astype(jnp.int32), 0, si - 2)
        return i0, (src - i0).astype(x.dtype)

    i0, fy = axis_coords(H, h2)
    j0, fx = axis_coords(W, w2s)
    rows = (y[:, :, i0, :] * (1 - fy)[None, None, :, None]
            + y[:, :, i0 + 1, :] * fy[None, None, :, None])
    up = rows[:, :, :, j0] * (1 - fx) + rows[:, :, :, j0 + 1] * fx
    return jax.nn.sigmoid(up) * x


if __name__ == "__main__":
    key = jax.random.PRNGKey(0)
    kx, kw1, kb1, kw2, kb2 = jax.random.split(key, 5)

    N, C, H, W = 2, 4, 16, 16
    x = jax.random.normal(kx, (N, C, H, W), jnp.float32)
    w1 = jax.random.normal(kw1, (C, 1, 3, 3), jnp.float32) * 0.3
    b1 = jax.random.normal(kb1, (C,), jnp.float32) * 0.1
    w2 = jax.random.normal(kw2, (C, 1, 3, 3), jnp.float32) * 0.3
    b2 = jax.random.normal(kb2, (C,), jnp.float32) * 0.1

    out = jax.block_until_ready(ge4_theo_forward(x, w1, b1, w2, b2))
    ref = jax.block_until_ready(_ref_forward(x, w1, b1, w2, b2))

    assert out.shape == x.shape and out.dtype == x.dtype
    np.testing.assert_allclose(np.asarray(out), np.asarray(ref), atol=2e-3, rtol=2e-3)
    print("KERNEL_OK")
</pallas_src>

<mosaic_0001>
module attributes {stable_mosaic.version = 11 : i64} {
  func.func @kernel(%arg0: i32, %arg1: i32, %arg2: memref<1x16x16x4xf32, #tpu.memory_space<vmem>>, %arg3: memref<9x4xf32, #tpu.memory_space<vmem>>, %arg4: memref<1x4xf32, #tpu.memory_space<vmem>>, %arg5: memref<9x4xf32, #tpu.memory_space<vmem>>, %arg6: memref<1x4xf32, #tpu.memory_space<vmem>>, %arg7: memref<1x16x1xf32, #tpu.memory_space<vmem>>, %arg8: memref<1x16x16x4xf32, #tpu.memory_space<vmem>>, %arg9: memref<18x18x4xf32, #tpu.memory_space<vmem>>, %arg10: memref<10x10x4xf32, #tpu.memory_space<vmem>>) attributes {dimension_semantics = [#tpu.dimension_semantics<parallel>, #tpu.dimension_semantics<parallel>], iteration_bounds = array<i64: 2, 1>, scalar_prefetch = 0 : i64, scratch_operands = 2 : i64, tpu.core_type = #tpu.core_type<tc>, window_params = [{transform_indices = @transform_0, window_bounds = array<i64: 1, 16, 16, 4>}, {transform_indices = @transform_1, window_bounds = array<i64: 9, 4>}, {transform_indices = @transform_2, window_bounds = array<i64: 1, 4>}, {transform_indices = @transform_3, window_bounds = array<i64: 9, 4>}, {transform_indices = @transform_4, window_bounds = array<i64: 1, 4>}, {pipeline_mode = #tpu.pipeline_mode<synchronous>, transform_indices = @transform_5, window_bounds = array<i64: 1, 16, 1>}, {transform_indices = @transform_6, window_bounds = array<i64: 1, 16, 16, 4>}]} {
    %c0 = arith.constant 0 : index
    %c0_0 = arith.constant 0 : index
    %c0_1 = arith.constant 0 : index
    %c0_2 = arith.constant 0 : index
    %0 = vector.load %arg2[%c0, %c0_0, %c0_1, %c0_2] : memref<1x16x16x4xf32, #tpu.memory_space<vmem>>, vector<1x16x16x4xf32>
    %1 = vector.shape_cast %0 : vector<1x16x16x4xf32> to vector<16x16x4xf32>
    %cst = arith.constant 0.000000e+00 : f32
    %2 = vector.broadcast %cst : f32 to vector<1x18x4xf32>
    %c0_3 = arith.constant 0 : index
    %c0_4 = arith.constant 0 : index
    %c0_5 = arith.constant 0 : index
    %3 = vector.load %arg9[%c0_3, %c0_4, %c0_5] : memref<18x18x4xf32, #tpu.memory_space<vmem>>, vector<1x18x4xf32>
    tpu.vector_store %arg9[%c0_3, %c0_4, %c0_5], %2 {strides = array<i32>} : memref<18x18x4xf32, #tpu.memory_space<vmem>>, vector<1x18x4xf32>,
    %cst_6 = arith.constant 0.000000e+00 : f32
    %4 = vector.broadcast %cst_6 : f32 to vector<1x18x4xf32>
    %c17 = arith.constant 17 : index
    %c0_7 = arith.constant 0 : index
    %c0_8 = arith.constant 0 : index
    %5 = vector.load %arg9[%c17, %c0_7, %c0_8] : memref<18x18x4xf32, #tpu.memory_space<vmem>>, vector<1x18x4xf32>
    tpu.vector_store %arg9[%c17, %c0_7, %c0_8], %4 {strides = array<i32>} : memref<18x18x4xf32, #tpu.memory_space<vmem>>, vector<1x18x4xf32>,
    %cst_9 = arith.constant 0.000000e+00 : f32
    %6 = vector.broadcast %cst_9 : f32 to vector<18x1x4xf32>
    %c0_10 = arith.constant 0 : index
    %c0_11 = arith.constant 0 : index
    %c0_12 = arith.constant 0 : index
    %7 = vector.load %arg9[%c0_10, %c0_11, %c0_12] : memref<18x18x4xf32, #tpu.memory_space<vmem>>, vector<18x1x4xf32>
    tpu.vector_store %arg9[%c0_10, %c0_11, %c0_12], %6 {strides = array<i32>} : memref<18x18x4xf32, #tpu.memory_space<vmem>>, vector<18x1x4xf32>,
    %cst_13 = arith.constant 0.000000e+00 : f32
    %8 = vector.broadcast %cst_13 : f32 to vector<18x1x4xf32>
    %c0_14 = arith.constant 0 : index
    %c17_15 = arith.constant 17 : index
    %c0_16 = arith.constant 0 : index
    %9 = vector.load %arg9[%c0_14, %c17_15, %c0_16] : memref<18x18x4xf32, #tpu.memory_space<vmem>>, vector<18x1x4xf32>
    tpu.vector_store %arg9[%c0_14, %c17_15, %c0_16], %8 {strides = array<i32>} : memref<18x18x4xf32, #tpu.memory_space<vmem>>, vector<18x1x4xf32>,
    %c1 = arith.constant 1 : index
    %c1_17 = arith.constant 1 : index
    %c0_18 = arith.constant 0 : index
    %10 = vector.load %arg9[%c1, %c1_17, %c0_18] : memref<18x18x4xf32, #tpu.memory_space<vmem>>, vector<16x16x4xf32>
    tpu.vector_store %arg9[%c1, %c1_17, %c0_18], %1 {strides = array<i32>} : memref<18x18x4xf32, #tpu.memory_space<vmem>>, vector<16x16x4xf32>,
    %c0_19 = arith.constant 0 : index
    %c0_20 = arith.constant 0 : index
    %11 = vector.load %arg3[%c0_19, %c0_20] : memref<9x4xf32, #tpu.memory_space<vmem>>, vector<9x4xf32>
    %c0_21 = arith.constant 0 : index
    %c0_22 = arith.constant 0 : index
    %12 = vector.load %arg4[%c0_21, %c0_22] : memref<1x4xf32, #tpu.memory_space<vmem>>, vector<1x4xf32>
    %c0_23 = arith.constant 0 : index
    %c0_24 = arith.constant 0 : index
    %c0_25 = arith.constant 0 : index
    %13 = tpu.strided_load %arg9[%c0_23, %c0_24, %c0_25] {strides = array<i32: 1, 2, 1>} : memref<18x18x4xf32, #tpu.memory_space<vmem>>, vector<18x9x4xf32>
    %c0_26 = arith.constant 0 : index
    %c1_27 = arith.constant 1 : index
    %c0_28 = arith.constant 0 : index
    %14 = tpu.strided_load %arg9[%c0_26, %c1_27, %c0_28] {strides = array<i32: 1, 2, 1>} : memref<18x18x4xf32, #tpu.memory_space<vmem>>, vector<18x8x4xf32>
    %15 = vector.shape_cast %13 : vector<18x9x4xf32> to vector<9x2x9x4xf32>
    %16 = vector.shape_cast %14 : vector<18x8x4xf32> to vector<9x2x8x4xf32>
    %17 = vector.extract_strided_slice %15 {offsets = [0, 0, 0, 0], sizes = [8, 1, 9, 4], strides = [1, 1, 1, 1]} : vector<9x2x9x4xf32> to vector<8x1x9x4xf32>
    %18 = vector.shape_cast %17 : vector<8x1x9x4xf32> to vector<8x9x4xf32>
    %19 = vector.extract_strided_slice %16 {offsets = [0, 0, 0, 0], sizes = [8, 1, 8, 4], strides = [1, 1, 1, 1]} : vector<9x2x8x4xf32> to vector<8x1x8x4xf32>
    %20 = vector.shape_cast %19 : vector<8x1x8x4xf32> to vector<8x8x4xf32>
    %21 = vector.extract_strided_slice %18 {offsets = [0, 0, 0], sizes = [8, 8, 4], strides = [1, 1, 1]} : vector<8x9x4xf32> to vector<8x8x4xf32>
    %22 = vector.extract_strided_slice %11 {offsets = [0, 0], sizes = [1, 4], strides = [1, 1]} : vector<9x4xf32> to vector<1x4xf32>
    %23 = vector.shape_cast %22 : vector<1x4xf32> to vector<4xf32>
    %24 = vector.shape_cast %23 : vector<4xf32> to vector<1x1x4xf32>
    %25 = vector.broadcast %24 : vector<1x1x4xf32> to vector<8x8x4xf32>
    %26 = arith.mulf %21, %25 : vector<8x8x4xf32>
    %27 = vector.extract_strided_slice %11 {offsets = [1, 0], sizes = [1, 4], strides = [1, 1]} : vector<9x4xf32> to vector<1x4xf32>
    %28 = vector.shape_cast %27 : vector<1x4xf32> to vector<4xf32>
    %29 = vector.shape_cast %28 : vector<4xf32> to vector<1x1x4xf32>
    %30 = vector.broadcast %29 : vector<1x1x4xf32> to vector<8x8x4xf32>
    %31 = arith.mulf %20, %30 : vector<8x8x4xf32>
    %32 = arith.addf %26, %31 : vector<8x8x4xf32>
    %33 = vector.extract_strided_slice %18 {offsets = [0, 1, 0], sizes = [8, 8, 4], strides = [1, 1, 1]} : vector<8x9x4xf32> to vector<8x8x4xf32>
    %34 = vector.extract_strided_slice %11 {offsets = [2, 0], sizes = [1, 4], strides = [1, 1]} : vector<9x4xf32> to vector<1x4xf32>
    %35 = vector.shape_cast %34 : vector<1x4xf32> to vector<4xf32>
    %36 = vector.shape_cast %35 : vector<4xf32> to vector<1x1x4xf32>
    %37 = vector.broadcast %36 : vector<1x1x4xf32> to vector<8x8x4xf32>
    %38 = arith.mulf %33, %37 : vector<8x8x4xf32>
    %39 = arith.addf %32, %38 : vector<8x8x4xf32>
    %40 = vector.extract_strided_slice %15 {offsets = [0, 1, 0, 0], sizes = [8, 1, 9, 4], strides = [1, 1, 1, 1]} : vector<9x2x9x4xf32> to vector<8x1x9x4xf32>
    %41 = vector.shape_cast %40 : vector<8x1x9x4xf32> to vector<8x9x4xf32>
    %42 = vector.extract_strided_slice %16 {offsets = [0, 1, 0, 0], sizes = [8, 1, 8, 4], strides = [1, 1, 1, 1]} : vector<9x2x8x4xf32> to vector<8x1x8x4xf32>
    %43 = vector.shape_cast %42 : vector<8x1x8x4xf32> to vector<8x8x4xf32>
    %44 = vector.extract_strided_slice %41 {offsets = [0, 0, 0], sizes = [8, 8, 4], strides = [1, 1, 1]} : vector<8x9x4xf32> to vector<8x8x4xf32>
    %45 = vector.extract_strided_slice %11 {offsets = [3, 0], sizes = [1, 4], strides = [1, 1]} : vector<9x4xf32> to vector<1x4xf32>
    %46 = vector.shape_cast %45 : vector<1x4xf32> to vector<4xf32>
    %47 = vector.shape_cast %46 : vector<4xf32> to vector<1x1x4xf32>
    %48 = vector.broadcast %47 : vector<1x1x4xf32> to vector<8x8x4xf32>
    %49 = arith.mulf %44, %48 : vector<8x8x4xf32>
    %50 = vector.extract_strided_slice %11 {offsets = [4, 0], sizes = [1, 4], strides = [1, 1]} : vector<9x4xf32> to vector<1x4xf32>
    %51 = vector.shape_cast %50 : vector<1x4xf32> to vector<4xf32>
    %52 = vector.shape_cast %51 : vector<4xf32> to vector<1x1x4xf32>
    %53 = vector.broadcast %52 : vector<1x1x4xf32> to vector<8x8x4xf32>
    %54 = arith.mulf %43, %53 : vector<8x8x4xf32>
    %55 = arith.addf %49, %54 : vector<8x8x4xf32>
    %56 = vector.extract_strided_slice %41 {offsets = [0, 1, 0], sizes = [8, 8, 4], strides = [1, 1, 1]} : vector<8x9x4xf32> to vector<8x8x4xf32>
    %57 = vector.extract_strided_slice %11 {offsets = [5, 0], sizes = [1, 4], strides = [1, 1]} : vector<9x4xf32> to vector<1x4xf32>
    %58 = vector.shape_cast %57 : vector<1x4xf32> to vector<4xf32>
    %59 = vector.shape_cast %58 : vector<4xf32> to vector<1x1x4xf32>
    %60 = vector.broadcast %59 : vector<1x1x4xf32> to vector<8x8x4xf32>
    %61 = arith.mulf %56, %60 : vector<8x8x4xf32>
    %62 = arith.addf %55, %61 : vector<8x8x4xf32>
    %63 = arith.addf %39, %62 : vector<8x8x4xf32>
    %64 = vector.extract_strided_slice %15 {offsets = [1, 0, 0, 0], sizes = [8, 1, 9, 4], strides = [1, 1, 1, 1]} : vector<9x2x9x4xf32> to vector<8x1x9x4xf32>
    %65 = vector.shape_cast %64 : vector<8x1x9x4xf32> to vector<8x9x4xf32>
    %66 = vector.extract_strided_slice %16 {offsets = [1, 0, 0, 0], sizes = [8, 1, 8, 4], strides = [1, 1, 1, 1]} : vector<9x2x8x4xf32> to vector<8x1x8x4xf32>
    %67 = vector.shape_cast %66 : vector<8x1x8x4xf32> to vector<8x8x4xf32>
    %68 = vector.extract_strided_slice %65 {offsets = [0, 0, 0], sizes = [8, 8, 4], strides = [1, 1, 1]} : vector<8x9x4xf32> to vector<8x8x4xf32>
    %69 = vector.extract_strided_slice %11 {offsets = [6, 0], sizes = [1, 4], strides = [1, 1]} : vector<9x4xf32> to vector<1x4xf32>
    %70 = vector.shape_cast %69 : vector<1x4xf32> to vector<4xf32>
    %71 = vector.shape_cast %70 : vector<4xf32> to vector<1x1x4xf32>
    %72 = vector.broadcast %71 : vector<1x1x4xf32> to vector<8x8x4xf32>
    %73 = arith.mulf %68, %72 : vector<8x8x4xf32>
    %74 = vector.extract_strided_slice %11 {offsets = [7, 0], sizes = [1, 4], strides = [1, 1]} : vector<9x4xf32> to vector<1x4xf32>
    %75 = vector.shape_cast %74 : vector<1x4xf32> to vector<4xf32>
    %76 = vector.shape_cast %75 : vector<4xf32> to vector<1x1x4xf32>
    %77 = vector.broadcast %76 : vector<1x1x4xf32> to vector<8x8x4xf32>
    %78 = arith.mulf %67, %77 : vector<8x8x4xf32>
    %79 = arith.addf %73, %78 : vector<8x8x4xf32>
    %80 = vector.extract_strided_slice %65 {offsets = [0, 1, 0], sizes = [8, 8, 4], strides = [1, 1, 1]} : vector<8x9x4xf32> to vector<8x8x4xf32>
    %81 = vector.extract_strided_slice %11 {offsets = [8, 0], sizes = [1, 4], strides = [1, 1]} : vector<9x4xf32> to vector<1x4xf32>
    %82 = vector.shape_cast %81 : vector<1x4xf32> to vector<4xf32>
    %83 = vector.shape_cast %82 : vector<4xf32> to vector<1x1x4xf32>
    %84 = vector.broadcast %83 : vector<1x1x4xf32> to vector<8x8x4xf32>
    %85 = arith.mulf %80, %84 : vector<8x8x4xf32>
    %86 = arith.addf %79, %85 : vector<8x8x4xf32>
    %87 = arith.addf %63, %86 : vector<8x8x4xf32>
    %88 = vector.shape_cast %12 : vector<1x4xf32> to vector<1x1x4xf32>
    %89 = vector.broadcast %88 : vector<1x1x4xf32> to vector<8x8x4xf32>
    %90 = arith.addf %87, %89 : vector<8x8x4xf32>
    %cst_29 = arith.constant 0.000000e+00 : f32
    %91 = vector.broadcast %cst_29 : f32 to vector<8x8x4xf32>
    %92 = arith.maximumf %90, %91 : vector<8x8x4xf32>
    %cst_30 = arith.constant 0.000000e+00 : f32
    %93 = vector.broadcast %cst_30 : f32 to vector<1x10x4xf32>
    %c0_31 = arith.constant 0 : index
    %c0_32 = arith.constant 0 : index
    %c0_33 = arith.constant 0 : index
    %94 = vector.load %arg10[%c0_31, %c0_32, %c0_33] : memref<10x10x4xf32, #tpu.memory_space<vmem>>, vector<1x10x4xf32>
    tpu.vector_store %arg10[%c0_31, %c0_32, %c0_33], %93 {strides = array<i32>} : memref<10x10x4xf32, #tpu.memory_space<vmem>>, vector<1x10x4xf32>,
    %cst_34 = arith.constant 0.000000e+00 : f32
    %95 = vector.broadcast %cst_34 : f32 to vector<1x10x4xf32>
    %c9 = arith.constant 9 : index
    %c0_35 = arith.constant 0 : index
    %c0_36 = arith.constant 0 : index
    %96 = vector.load %arg10[%c9, %c0_35, %c0_36] : memref<10x10x4xf32, #tpu.memory_space<vmem>>, vector<1x10x4xf32>
    tpu.vector_store %arg10[%c9, %c0_35, %c0_36], %95 {strides = array<i32>} : memref<10x10x4xf32, #tpu.memory_space<vmem>>, vector<1x10x4xf32>,
    %cst_37 = arith.constant 0.000000e+00 : f32
    %97 = vector.broadcast %cst_37 : f32 to vector<10x1x4xf32>
    %c0_38 = arith.constant 0 : index
    %c0_39 = arith.constant 0 : index
    %c0_40 = arith.constant 0 : index
    %98 = vector.load %arg10[%c0_38, %c0_39, %c0_40] : memref<10x10x4xf32, #tpu.memory_space<vmem>>, vector<10x1x4xf32>
    tpu.vector_store %arg10[%c0_38, %c0_39, %c0_40], %97 {strides = array<i32>} : memref<10x10x4xf32, #tpu.memory_space<vmem>>, vector<10x1x4xf32>,
    %cst_41 = arith.constant 0.000000e+00 : f32
    %99 = vector.broadcast %cst_41 : f32 to vector<10x1x4xf32>
    %c0_42 = arith.constant 0 : index
    %c9_43 = arith.constant 9 : index
    %c0_44 = arith.constant 0 : index
    %100 = vector.load %arg10[%c0_42, %c9_43, %c0_44] : memref<10x10x4xf32, #tpu.memory_space<vmem>>, vector<10x1x4xf32>
    tpu.vector_store %arg10[%c0_42, %c9_43, %c0_44], %99 {strides = array<i32>} : memref<10x10x4xf32, #tpu.memory_space<vmem>>, vector<10x1x4xf32>,
    %c1_45 = arith.constant 1 : index
    %c1_46 = arith.constant 1 : index
    %c0_47 = arith.constant 0 : index
    %101 = vector.load %arg10[%c1_45, %c1_46, %c0_47] : memref<10x10x4xf32, #tpu.memory_space<vmem>>, vector<8x8x4xf32>
    tpu.vector_store %arg10[%c1_45, %c1_46, %c0_47], %92 {strides = array<i32>} : memref<10x10x4xf32, #tpu.memory_space<vmem>>, vector<8x8x4xf32>,
    %c0_48 = arith.constant 0 : index
    %c0_49 = arith.constant 0 : index
    %102 = vector.load %arg5[%c0_48, %c0_49] : memref<9x4xf32, #tpu.memory_space<vmem>>, vector<9x4xf32>
    %c0_50 = arith.constant 0 : index
    %c0_51 = arith.constant 0 : index
    %103 = vector.load %arg6[%c0_50, %c0_51] : memref<1x4xf32, #tpu.memory_space<vmem>>, vector<1x4xf32>
    %c0_52 = arith.constant 0 : index
    %c0_53 = arith.constant 0 : index
    %c0_54 = arith.constant 0 : index
    %104 = tpu.strided_load %arg10[%c0_52, %c0_53, %c0_54] {strides = array<i32: 1, 2, 1>} : memref<10x10x4xf32, #tpu.memory_space<vmem>>, vector<10x5x4xf32>
    %c0_55 = arith.constant 0 : index
    %c1_56 = arith.constant 1 : index
    %c0_57 = arith.constant 0 : index
    %105 = tpu.strided_load %arg10[%c0_55, %c1_56, %c0_57] {strides = array<i32: 1, 2, 1>} : memref<10x10x4xf32, #tpu.memory_space<vmem>>, vector<10x4x4xf32>
    %106 = vector.shape_cast %104 : vector<10x5x4xf32> to vector<5x2x5x4xf32>
    %107 = vector.shape_cast %105 : vector<10x4x4xf32> to vector<5x2x4x4xf32>
    %108 = vector.extract_strided_slice %106 {offsets = [0, 0, 0, 0], sizes = [4, 1, 5, 4], strides = [1, 1, 1, 1]} : vector<5x2x5x4xf32> to vector<4x1x5x4xf32>
    %109 = vector.shape_cast %108 : vector<4x1x5x4xf32> to vector<4x5x4xf32>
    %110 = vector.extract_strided_slice %107 {offsets = [0, 0, 0, 0], sizes = [4, 1, 4, 4], strides = [1, 1, 1, 1]} : vector<5x2x4x4xf32> to vector<4x1x4x4xf32>
    %111 = vector.shape_cast %110 : vector<4x1x4x4xf32> to vector<4x4x4xf32>
    %112 = vector.extract_strided_slice %109 {offsets = [0, 0, 0], sizes = [4, 4, 4], strides = [1, 1, 1]} : vector<4x5x4xf32> to vector<4x4x4xf32>
    %113 = vector.extract_strided_slice %102 {offsets = [0, 0], sizes = [1, 4], strides = [1, 1]} : vector<9x4xf32> to vector<1x4xf32>
    %114 = vector.shape_cast %113 : vector<1x4xf32> to vector<4xf32>
    %115 = vector.shape_cast %114 : vector<4xf32> to vector<1x1x4xf32>
    %116 = vector.broadcast %115 : vector<1x1x4xf32> to vector<4x4x4xf32>
    %117 = arith.mulf %112, %116 : vector<4x4x4xf32>
    %118 = vector.extract_strided_slice %102 {offsets = [1, 0], sizes = [1, 4], strides = [1, 1]} : vector<9x4xf32> to vector<1x4xf32>
    %119 = vector.shape_cast %118 : vector<1x4xf32> to vector<4xf32>
    %120 = vector.shape_cast %119 : vector<4xf32> to vector<1x1x4xf32>
    %121 = vector.broadcast %120 : vector<1x1x4xf32> to vector<4x4x4xf32>
    %122 = arith.mulf %111, %121 : vector<4x4x4xf32>
    %123 = arith.addf %117, %122 : vector<4x4x4xf32>
    %124 = vector.extract_strided_slice %109 {offsets = [0, 1, 0], sizes = [4, 4, 4], strides = [1, 1, 1]} : vector<4x5x4xf32> to vector<4x4x4xf32>
    %125 = vector.extract_strided_slice %102 {offsets = [2, 0], sizes = [1, 4], strides = [1, 1]} : vector<9x4xf32> to vector<1x4xf32>
    %126 = vector.shape_cast %125 : vector<1x4xf32> to vector<4xf32>
    %127 = vector.shape_cast %126 : vector<4xf32> to vector<1x1x4xf32>
    %128 = vector.broadcast %127 : vector<1x1x4xf32> to vector<4x4x4xf32>
    %129 = arith.mulf %124, %128 : vector<4x4x4xf32>
    %130 = arith.addf %123, %129 : vector<4x4x4xf32>
    %131 = vector.extract_strided_slice %106 {offsets = [0, 1, 0, 0], sizes = [4, 1, 5, 4], strides = [1, 1, 1, 1]} : vector<5x2x5x4xf32> to vector<4x1x5x4xf32>
    %132 = vector.shape_cast %131 : vector<4x1x5x4xf32> to vector<4x5x4xf32>
    %133 = vector.extract_strided_slice %107 {offsets = [0, 1, 0, 0], sizes = [4, 1, 4, 4], strides = [1, 1, 1, 1]} : vector<5x2x4x4xf32> to vector<4x1x4x4xf32>
    %134 = vector.shape_cast %133 : vector<4x1x4x4xf32> to vector<4x4x4xf32>
    %135 = vector.extract_strided_slice %132 {offsets = [0, 0, 0], sizes = [4, 4, 4], strides = [1, 1, 1]} : vector<4x5x4xf32> to vector<4x4x4xf32>
    %136 = vector.extract_strided_slice %102 {offsets = [3, 0], sizes = [1, 4], strides = [1, 1]} : vector<9x4xf32> to vector<1x4xf32>
    %137 = vector.shape_cast %136 : vector<1x4xf32> to vector<4xf32>
    %138 = vector.shape_cast %137 : vector<4xf32> to vector<1x1x4xf32>
    %139 = vector.broadcast %138 : vector<1x1x4xf32> to vector<4x4x4xf32>
    %140 = arith.mulf %135, %139 : vector<4x4x4xf32>
    %141 = vector.extract_strided_slice %102 {offsets = [4, 0], sizes = [1, 4], strides = [1, 1]} : vector<9x4xf32> to vector<1x4xf32>
    %142 = vector.shape_cast %141 : vector<1x4xf32> to vector<4xf32>
    %143 = vector.shape_cast %142 : vector<4xf32> to vector<1x1x4xf32>
    %144 = vector.broadcast %143 : vector<1x1x4xf32> to vector<4x4x4xf32>
    %145 = arith.mulf %134, %144 : vector<4x4x4xf32>
    %146 = arith.addf %140, %145 : vector<4x4x4xf32>
    %147 = vector.extract_strided_slice %132 {offsets = [0, 1, 0], sizes = [4, 4, 4], strides = [1, 1, 1]} : vector<4x5x4xf32> to vector<4x4x4xf32>
    %148 = vector.extract_strided_slice %102 {offsets = [5, 0], sizes = [1, 4], strides = [1, 1]} : vector<9x4xf32> to vector<1x4xf32>
    %149 = vector.shape_cast %148 : vector<1x4xf32> to vector<4xf32>
    %150 = vector.shape_cast %149 : vector<4xf32> to vector<1x1x4xf32>
    %151 = vector.broadcast %150 : vector<1x1x4xf32> to vector<4x4x4xf32>
    %152 = arith.mulf %147, %151 : vector<4x4x4xf32>
    %153 = arith.addf %146, %152 : vector<4x4x4xf32>
    %154 = arith.addf %130, %153 : vector<4x4x4xf32>
    %155 = vector.extract_strided_slice %106 {offsets = [1, 0, 0, 0], sizes = [4, 1, 5, 4], strides = [1, 1, 1, 1]} : vector<5x2x5x4xf32> to vector<4x1x5x4xf32>
    %156 = vector.shape_cast %155 : vector<4x1x5x4xf32> to vector<4x5x4xf32>
    %157 = vector.extract_strided_slice %107 {offsets = [1, 0, 0, 0], sizes = [4, 1, 4, 4], strides = [1, 1, 1, 1]} : vector<5x2x4x4xf32> to vector<4x1x4x4xf32>
    %158 = vector.shape_cast %157 : vector<4x1x4x4xf32> to vector<4x4x4xf32>
    %159 = vector.extract_strided_slice %156 {offsets = [0, 0, 0], sizes = [4, 4, 4], strides = [1, 1, 1]} : vector<4x5x4xf32> to vector<4x4x4xf32>
    %160 = vector.extract_strided_slice %102 {offsets = [6, 0], sizes = [1, 4], strides = [1, 1]} : vector<9x4xf32> to vector<1x4xf32>
    %161 = vector.shape_cast %160 : vector<1x4xf32> to vector<4xf32>
    %162 = vector.shape_cast %161 : vector<4xf32> to vector<1x1x4xf32>
    %163 = vector.broadcast %162 : vector<1x1x4xf32> to vector<4x4x4xf32>
    %164 = arith.mulf %159, %163 : vector<4x4x4xf32>
    %165 = vector.extract_strided_slice %102 {offsets = [7, 0], sizes = [1, 4], strides = [1, 1]} : vector<9x4xf32> to vector<1x4xf32>
    %166 = vector.shape_cast %165 : vector<1x4xf32> to vector<4xf32>
    %167 = vector.shape_cast %166 : vector<4xf32> to vector<1x1x4xf32>
    %168 = vector.broadcast %167 : vector<1x1x4xf32> to vector<4x4x4xf32>
    %169 = arith.mulf %158, %168 : vector<4x4x4xf32>
    %170 = arith.addf %164, %169 : vector<4x4x4xf32>
    %171 = vector.extract_strided_slice %156 {offsets = [0, 1, 0], sizes = [4, 4, 4], strides = [1, 1, 1]} : vector<4x5x4xf32> to vector<4x4x4xf32>
    %172 = vector.extract_strided_slice %102 {offsets = [8, 0], sizes = [1, 4], strides = [1, 1]} : vector<9x4xf32> to vector<1x4xf32>
    %173 = vector.shape_cast %172 : vector<1x4xf32> to vector<4xf32>
    %174 = vector.shape_cast %173 : vector<4xf32> to vector<1x1x4xf32>
    %175 = vector.broadcast %174 : vector<1x1x4xf32> to vector<4x4x4xf32>
    %176 = arith.mulf %171, %175 : vector<4x4x4xf32>
    %177 = arith.addf %170, %176 : vector<4x4x4xf32>
    %178 = arith.addf %154, %177 : vector<4x4x4xf32>
    %179 = vector.shape_cast %103 : vector<1x4xf32> to vector<1x1x4xf32>
    %180 = vector.broadcast %179 : vector<1x1x4xf32> to vector<4x4x4xf32>
    %181 = arith.addf %178, %180 : vector<4x4x4xf32>
    %182 = vector.extract_strided_slice %181 {offsets = [0, 0, 0], sizes = [1, 4, 4], strides = [1, 1, 1]} : vector<4x4x4xf32> to vector<1x4x4xf32>
    %183 = vector.shape_cast %182 : vector<1x4x4xf32> to vector<4x4xf32>
    %184 = vector.extract_strided_slice %181 {offsets = [0, 0, 0], sizes = [1, 4, 4], strides = [1, 1, 1]} : vector<4x4x4xf32> to vector<1x4x4xf32>
    %185 = vector.shape_cast %184 : vector<1x4x4xf32> to vector<4x4xf32>
    %cst_58 = arith.constant 8.000000e-01 : f32
    %186 = vector.broadcast %cst_58 : f32 to vector<4x4xf32>
    %187 = arith.mulf %185, %186 : vector<4x4xf32>
    %188 = vector.extract_strided_slice %181 {offsets = [1, 0, 0], sizes = [1, 4, 4], strides = [1, 1, 1]} : vector<4x4x4xf32> to vector<1x4x4xf32>
    %189 = vector.shape_cast %188 : vector<1x4x4xf32> to vector<4x4xf32>
    %cst_59 = arith.constant 2.000000e-01 : f32
    %190 = vector.broadcast %cst_59 : f32 to vector<4x4xf32>
    %191 = arith.mulf %189, %190 : vector<4x4xf32>
    %192 = arith.addf %187, %191 : vector<4x4xf32>
    %193 = vector.extract_strided_slice %181 {offsets = [0, 0, 0], sizes = [1, 4, 4], strides = [1, 1, 1]} : vector<4x4x4xf32> to vector<1x4x4xf32>
    %194 = vector.shape_cast %193 : vector<1x4x4xf32> to vector<4x4xf32>
    %cst_60 = arith.constant 6.000000e-01 : f32
    %195 = vector.broadcast %cst_60 : f32 to vector<4x4xf32>
    %196 = arith.mulf %194, %195 : vector<4x4xf32>
    %197 = vector.extract_strided_slice %181 {offsets = [1, 0, 0], sizes = [1, 4, 4], strides = [1, 1, 1]} : vector<4x4x4xf32> to vector<1x4x4xf32>
    %198 = vector.shape_cast %197 : vector<1x4x4xf32> to vector<4x4xf32>
    %cst_61 = arith.constant 4.000000e-01 : f32
    %199 = vector.broadcast %cst_61 : f32 to vector<4x4xf32>
    %200 = arith.mulf %198, %199 : vector<4x4xf32>
    %201 = arith.addf %196, %200 : vector<4x4xf32>
    %202 = vector.extract_strided_slice %181 {offsets = [0, 0, 0], sizes = [1, 4, 4], strides = [1, 1, 1]} : vector<4x4x4xf32> to vector<1x4x4xf32>
    %203 = vector.shape_cast %202 : vector<1x4x4xf32> to vector<4x4xf32>
    %cst_62 = arith.constant 0.399999976 : f32
    %204 = vector.broadcast %cst_62 : f32 to vector<4x4xf32>
    %205 = arith.mulf %203, %204 : vector<4x4xf32>
    %206 = vector.extract_strided_slice %181 {offsets = [1, 0, 0], sizes = [1, 4, 4], strides = [1, 1, 1]} : vector<4x4x4xf32> to vector<1x4x4xf32>
    %207 = vector.shape_cast %206 : vector<1x4x4xf32> to vector<4x4xf32>
    %cst_63 = arith.constant 6.000000e-01 : f32
    %208 = vector.broadcast %cst_63 : f32 to vector<4x4xf32>
    %209 = arith.mulf %207, %208 : vector<4x4xf32>
    %210 = arith.addf %205, %209 : vector<4x4xf32>
    %211 = vector.extract_strided_slice %181 {offsets = [0, 0, 0], sizes = [1, 4, 4], strides = [1, 1, 1]} : vector<4x4x4xf32> to vector<1x4x4xf32>
    %212 = vector.shape_cast %211 : vector<1x4x4xf32> to vector<4x4xf32>
    %cst_64 = arith.constant 0.199999988 : f32
    %213 = vector.broadcast %cst_64 : f32 to vector<4x4xf32>
    %214 = arith.mulf %212, %213 : vector<4x4xf32>
    %215 = vector.extract_strided_slice %181 {offsets = [1, 0, 0], sizes = [1, 4, 4], strides = [1, 1, 1]} : vector<4x4x4xf32> to vector<1x4x4xf32>
    %216 = vector.shape_cast %215 : vector<1x4x4xf32> to vector<4x4xf32>
    %cst_65 = arith.constant 8.000000e-01 : f32
    %217 = vector.broadcast %cst_65 : f32 to vector<4x4xf32>
    %218 = arith.mulf %216, %217 : vector<4x4xf32>
    %219 = arith.addf %214, %218 : vector<4x4xf32>
    %220 = vector.extract_strided_slice %181 {offsets = [1, 0, 0], sizes = [1, 4, 4], strides = [1, 1, 1]} : vector<4x4x4xf32> to vector<1x4x4xf32>
    %221 = vector.shape_cast %220 : vector<1x4x4xf32> to vector<4x4xf32>
    %222 = vector.extract_strided_slice %181 {offsets = [1, 0, 0], sizes = [1, 4, 4], strides = [1, 1, 1]} : vector<4x4x4xf32> to vector<1x4x4xf32>
    %223 = vector.shape_cast %222 : vector<1x4x4xf32> to vector<4x4xf32>
    %cst_66 = arith.constant 8.000000e-01 : f32
    %224 = vector.broadcast %cst_66 : f32 to vector<4x4xf32>
    %225 = arith.mulf %223, %224 : vector<4x4xf32>
    %226 = vector.extract_strided_slice %181 {offsets = [2, 0, 0], sizes = [1, 4, 4], strides = [1, 1, 1]} : vector<4x4x4xf32> to vector<1x4x4xf32>
    %227 = vector.shape_cast %226 : vector<1x4x4xf32> to vector<4x4xf32>
    %cst_67 = arith.constant 2.000000e-01 : f32
    %228 = vector.broadcast %cst_67 : f32 to vector<4x4xf32>
    %229 = arith.mulf %227, %228 : vector<4x4xf32>
    %230 = arith.addf %225, %229 : vector<4x4xf32>
    %231 = vector.extract_strided_slice %181 {offsets = [1, 0, 0], sizes = [1, 4, 4], strides = [1, 1, 1]} : vector<4x4x4xf32> to vector<1x4x4xf32>
    %232 = vector.shape_cast %231 : vector<1x4x4xf32> to vector<4x4xf32>
    %cst_68 = arith.constant 6.000000e-01 : f32
    %233 = vector.broadcast %cst_68 : f32 to vector<4x4xf32>
    %234 = arith.mulf %232, %233 : vector<4x4xf32>
    %235 = vector.extract_strided_slice %181 {offsets = [2, 0, 0], sizes = [1, 4, 4], strides = [1, 1, 1]} : vector<4x4x4xf32> to vector<1x4x4xf32>
    %236 = vector.shape_cast %235 : vector<1x4x4xf32> to vector<4x4xf32>
    %cst_69 = arith.constant 4.000000e-01 : f32
    %237 = vector.broadcast %cst_69 : f32 to vector<4x4xf32>
    %238 = arith.mulf %236, %237 : vector<4x4xf32>
    %239 = arith.addf %234, %238 : vector<4x4xf32>
    %240 = vector.extract_strided_slice %181 {offsets = [1, 0, 0], sizes = [1, 4, 4], strides = [1, 1, 1]} : vector<4x4x4xf32> to vector<1x4x4xf32>
    %241 = vector.shape_cast %240 : vector<1x4x4xf32> to vector<4x4xf32>
    %cst_70 = arith.constant 0.399999976 : f32
    %242 = vector.broadcast %cst_70 : f32 to vector<4x4xf32>
    %243 = arith.mulf %241, %242 : vector<4x4xf32>
    %244 = vector.extract_strided_slice %181 {offsets = [2, 0, 0], sizes = [1, 4, 4], strides = [1, 1, 1]} : vector<4x4x4xf32> to vector<1x4x4xf32>
    %245 = vector.shape_cast %244 : vector<1x4x4xf32> to vector<4x4xf32>
    %cst_71 = arith.constant 6.000000e-01 : f32
    %246 = vector.broadcast %cst_71 : f32 to vector<4x4xf32>
    %247 = arith.mulf %245, %246 : vector<4x4xf32>
    %248 = arith.addf %243, %247 : vector<4x4xf32>
    %249 = vector.extract_strided_slice %181 {offsets = [1, 0, 0], sizes = [1, 4, 4], strides = [1, 1, 1]} : vector<4x4x4xf32> to vector<1x4x4xf32>
    %250 = vector.shape_cast %249 : vector<1x4x4xf32> to vector<4x4xf32>
    %cst_72 = arith.constant 0.199999988 : f32
    %251 = vector.broadcast %cst_72 : f32 to vector<4x4xf32>
    %252 = arith.mulf %250, %251 : vector<4x4xf32>
    %253 = vector.extract_strided_slice %181 {offsets = [2, 0, 0], sizes = [1, 4, 4], strides = [1, 1, 1]} : vector<4x4x4xf32> to vector<1x4x4xf32>
    %254 = vector.shape_cast %253 : vector<1x4x4xf32> to vector<4x4xf32>
    %cst_73 = arith.constant 8.000000e-01 : f32
    %255 = vector.broadcast %cst_73 : f32 to vector<4x4xf32>
    %256 = arith.mulf %254, %255 : vector<4x4xf32>
    %257 = arith.addf %252, %256 : vector<4x4xf32>
    %258 = vector.extract_strided_slice %181 {offsets = [2, 0, 0], sizes = [1, 4, 4], strides = [1, 1, 1]} : vector<4x4x4xf32> to vector<1x4x4xf32>
    %259 = vector.shape_cast %258 : vector<1x4x4xf32> to vector<4x4xf32>
    %260 = vector.extract_strided_slice %181 {offsets = [2, 0, 0], sizes = [1, 4, 4], strides = [1, 1, 1]} : vector<4x4x4xf32> to vector<1x4x4xf32>
    %261 = vector.shape_cast %260 : vector<1x4x4xf32> to vector<4x4xf32>
    %cst_74 = arith.constant 8.000000e-01 : f32
    %262 = vector.broadcast %cst_74 : f32 to vector<4x4xf32>
    %263 = arith.mulf %261, %262 : vector<4x4xf32>
    %264 = vector.extract_strided_slice %181 {offsets = [3, 0, 0], sizes = [1, 4, 4], strides = [1, 1, 1]} : vector<4x4x4xf32> to vector<1x4x4xf32>
    %265 = vector.shape_cast %264 : vector<1x4x4xf32> to vector<4x4xf32>
    %cst_75 = arith.constant 2.000000e-01 : f32
    %266 = vector.broadcast %cst_75 : f32 to vector<4x4xf32>
    %267 = arith.mulf %265, %266 : vector<4x4xf32>
    %268 = arith.addf %263, %267 : vector<4x4xf32>
    %269 = vector.extract_strided_slice %181 {offsets = [2, 0, 0], sizes = [1, 4, 4], strides = [1, 1, 1]} : vector<4x4x4xf32> to vector<1x4x4xf32>
    %270 = vector.shape_cast %269 : vector<1x4x4xf32> to vector<4x4xf32>
    %cst_76 = arith.constant 6.000000e-01 : f32
    %271 = vector.broadcast %cst_76 : f32 to vector<4x4xf32>
    %272 = arith.mulf %270, %271 : vector<4x4xf32>
    %273 = vector.extract_strided_slice %181 {offsets = [3, 0, 0], sizes = [1, 4, 4], strides = [1, 1, 1]} : vector<4x4x4xf32> to vector<1x4x4xf32>
    %274 = vector.shape_cast %273 : vector<1x4x4xf32> to vector<4x4xf32>
    %cst_77 = arith.constant 4.000000e-01 : f32
    %275 = vector.broadcast %cst_77 : f32 to vector<4x4xf32>
    %276 = arith.mulf %274, %275 : vector<4x4xf32>
    %277 = arith.addf %272, %276 : vector<4x4xf32>
    %278 = vector.extract_strided_slice %181 {offsets = [2, 0, 0], sizes = [1, 4, 4], strides = [1, 1, 1]} : vector<4x4x4xf32> to vector<1x4x4xf32>
    %279 = vector.shape_cast %278 : vector<1x4x4xf32> to vector<4x4xf32>
    %cst_78 = arith.constant 0.399999976 : f32
    %280 = vector.broadcast %cst_78 : f32 to vector<4x4xf32>
    %281 = arith.mulf %279, %280 : vector<4x4xf32>
    %282 = vector.extract_strided_slice %181 {offsets = [3, 0, 0], sizes = [1, 4, 4], strides = [1, 1, 1]} : vector<4x4x4xf32> to vector<1x4x4xf32>
    %283 = vector.shape_cast %282 : vector<1x4x4xf32> to vector<4x4xf32>
    %cst_79 = arith.constant 6.000000e-01 : f32
    %284 = vector.broadcast %cst_79 : f32 to vector<4x4xf32>
    %285 = arith.mulf %283, %284 : vector<4x4xf32>
    %286 = arith.addf %281, %285 : vector<4x4xf32>
    %287 = vector.extract_strided_slice %181 {offsets = [2, 0, 0], sizes = [1, 4, 4], strides = [1, 1, 1]} : vector<4x4x4xf32> to vector<1x4x4xf32>
    %288 = vector.shape_cast %287 : vector<1x4x4xf32> to vector<4x4xf32>
    %cst_80 = arith.constant 0.199999988 : f32
    %289 = vector.broadcast %cst_80 : f32 to vector<4x4xf32>
    %290 = arith.mulf %288, %289 : vector<4x4xf32>
    %291 = vector.extract_strided_slice %181 {offsets = [3, 0, 0], sizes = [1, 4, 4], strides = [1, 1, 1]} : vector<4x4x4xf32> to vector<1x4x4xf32>
    %292 = vector.shape_cast %291 : vector<1x4x4xf32> to vector<4x4xf32>
    %cst_81 = arith.constant 8.000000e-01 : f32
    %293 = vector.broadcast %cst_81 : f32 to vector<4x4xf32>
    %294 = arith.mulf %292, %293 : vector<4x4xf32>
    %295 = arith.addf %290, %294 : vector<4x4xf32>
    %296 = vector.extract_strided_slice %181 {offsets = [3, 0, 0], sizes = [1, 4, 4], strides = [1, 1, 1]} : vector<4x4x4xf32> to vector<1x4x4xf32>
    %297 = vector.shape_cast %296 : vector<1x4x4xf32> to vector<4x4xf32>
    %298 = vector.shape_cast %183 : vector<4x4xf32> to vector<1x4x4xf32>
    %299 = vector.shape_cast %192 : vector<4x4xf32> to vector<1x4x4xf32>
    %300 = vector.shape_cast %201 : vector<4x4xf32> to vector<1x4x4xf32>
    %301 = vector.shape_cast %210 : vector<4x4xf32> to vector<1x4x4xf32>
    %302 = vector.shape_cast %219 : vector<4x4xf32> to vector<1x4x4xf32>
    %303 = vector.shape_cast %221 : vector<4x4xf32> to vector<1x4x4xf32>
    %304 = vector.shape_cast %230 : vector<4x4xf32> to vector<1x4x4xf32>
    %305 = vector.shape_cast %239 : vector<4x4xf32> to vector<1x4x4xf32>
    %306 = vector.shape_cast %248 : vector<4x4xf32> to vector<1x4x4xf32>
    %307 = vector.shape_cast %257 : vector<4x4xf32> to vector<1x4x4xf32>
    %308 = vector.shape_cast %259 : vector<4x4xf32> to vector<1x4x4xf32>
    %309 = vector.shape_cast %268 : vector<4x4xf32> to vector<1x4x4xf32>
    %310 = vector.shape_cast %277 : vector<4x4xf32> to vector<1x4x4xf32>
    %311 = vector.shape_cast %286 : vector<4x4xf32> to vector<1x4x4xf32>
    %312 = vector.shape_cast %295 : vector<4x4xf32> to vector<1x4x4xf32>
    %313 = vector.shape_cast %297 : vector<4x4xf32> to vector<1x4x4xf32>
    %314 = tpu.concatenate %298, %299, %300, %301, %302, %303, %304, %305, %306, %307, %308, %309, %310, %311, %312, %313 in 0 : vector<1x4x4xf32>, vector<1x4x4xf32>, vector<1x4x4xf32>, vector<1x4x4xf32>, vector<1x4x4xf32>, vector<1x4x4xf32>, vector<1x4x4xf32>, vector<1x4x4xf32>, vector<1x4x4xf32>, vector<1x4x4xf32>, vector<1x4x4xf32>, vector<1x4x4xf32>, vector<1x4x4xf32>, vector<1x4x4xf32>, vector<1x4x4xf32>, vector<1x4x4xf32> -> vector<16x4x4xf32>
    %315 = vector.extract_strided_slice %314 {offsets = [0, 0, 0], sizes = [16, 1, 4], strides = [1, 1, 1]} : vector<16x4x4xf32> to vector<16x1x4xf32>
    %316 = vector.shape_cast %315 : vector<16x1x4xf32> to vector<16x1x4xf32>
    %317 = vector.broadcast %316 : vector<16x1x4xf32> to vector<16x5x4xf32>
    %318 = vector.extract_strided_slice %314 {offsets = [0, 1, 0], sizes = [16, 1, 4], strides = [1, 1, 1]} : vector<16x4x4xf32> to vector<16x1x4xf32>
    %319 = vector.shape_cast %318 : vector<16x1x4xf32> to vector<16x1x4xf32>
    %320 = vector.broadcast %319 : vector<16x1x4xf32> to vector<16x5x4xf32>
    %321 = vector.extract_strided_slice %314 {offsets = [0, 2, 0], sizes = [16, 1, 4], strides = [1, 1, 1]} : vector<16x4x4xf32> to vector<16x1x4xf32>
    %322 = vector.shape_cast %321 : vector<16x1x4xf32> to vector<16x1x4xf32>
    %323 = vector.broadcast %322 : vector<16x1x4xf32> to vector<16x6x4xf32>
    %324 = tpu.concatenate %317, %320, %323 in 1 : vector<16x5x4xf32>, vector<16x5x4xf32>, vector<16x6x4xf32> -> vector<16x16x4xf32>
    %325 = vector.extract_strided_slice %314 {offsets = [0, 1, 0], sizes = [16, 1, 4], strides = [1, 1, 1]} : vector<16x4x4xf32> to vector<16x1x4xf32>
    %326 = vector.shape_cast %325 : vector<16x1x4xf32> to vector<16x1x4xf32>
    %327 = vector.broadcast %326 : vector<16x1x4xf32> to vector<16x5x4xf32>
    %328 = vector.extract_strided_slice %314 {offsets = [0, 2, 0], sizes = [16, 1, 4], strides = [1, 1, 1]} : vector<16x4x4xf32> to vector<16x1x4xf32>
    %329 = vector.shape_cast %328 : vector<16x1x4xf32> to vector<16x1x4xf32>
    %330 = vector.broadcast %329 : vector<16x1x4xf32> to vector<16x5x4xf32>
    %331 = vector.extract_strided_slice %314 {offsets = [0, 3, 0], sizes = [16, 1, 4], strides = [1, 1, 1]} : vector<16x4x4xf32> to vector<16x1x4xf32>
    %332 = vector.shape_cast %331 : vector<16x1x4xf32> to vector<16x1x4xf32>
    %333 = vector.broadcast %332 : vector<16x1x4xf32> to vector<16x6x4xf32>
    %334 = tpu.concatenate %327, %330, %333 in 1 : vector<16x5x4xf32>, vector<16x5x4xf32>, vector<16x6x4xf32> -> vector<16x16x4xf32>
    %335 = arith.subf %334, %324 : vector<16x16x4xf32>
    %c0_82 = arith.constant 0 : index
    %c0_83 = arith.constant 0 : index
    %c0_84 = arith.constant 0 : index
    %336 = vector.load %arg7[%c0_82, %c0_83, %c0_84] : memref<1x16x1xf32, #tpu.memory_space<vmem>>, vector<1x16x1xf32>
    %337 = vector.broadcast %336 : vector<1x16x1xf32> to vector<16x16x4xf32>
    %338 = arith.mulf %335, %337 : vector<16x16x4xf32>
    %339 = arith.addf %324, %338 : vector<16x16x4xf32>
    %340 = arith.negf %339 : vector<16x16x4xf32>
    %341 = math.exp %340 : vector<16x16x4xf32>
    %cst_85 = arith.constant 1.000000e+00 : f32
    %342 = vector.broadcast %cst_85 : f32 to vector<16x16x4xf32>
    %343 = arith.addf %342, %341 : vector<16x16x4xf32>
    %344 = arith.divf %342, %343 : vector<16x16x4xf32>
    %345 = arith.mulf %344, %1 : vector<16x16x4xf32>
    %c0_86 = arith.constant 0 : index
    %c0_87 = arith.constant 0 : index
    %c0_88 = arith.constant 0 : index
    %c0_89 = arith.constant 0 : index
    %346 = vector.load %arg8[%c0_86, %c0_87, %c0_88, %c0_89] : memref<1x16x16x4xf32, #tpu.memory_space<vmem>>, vector<1x16x16x4xf32>
    %347 = vector.shape_cast %346 : vector<1x16x16x4xf32> to vector<16x16x4xf32>
    %348 = vector.shape_cast %345 : vector<16x16x4xf32> to vector<1x16x16x4xf32>
    tpu.vector_store %arg8[%c0_86, %c0_87, %c0_88, %c0_89], %348 {strides = array<i32>} : memref<1x16x16x4xf32, #tpu.memory_space<vmem>>, vector<1x16x16x4xf32>,
    return
  }
  func.func @transform_0(%arg0: i32, %arg1: i32) -> (i32, i32, i32, i32) {
    %c0_i32 = arith.constant 0 : i32
    %c0_i32_0 = arith.constant 0 : i32
    %c0_i32_1 = arith.constant 0 : i32
    return %arg0, %c0_i32, %c0_i32_0, %arg1 : i32, i32, i32, i32
  }
  func.func @transform_1(%arg0: i32, %arg1: i32) -> (i32, i32) {
    %c0_i32 = arith.constant 0 : i32
    %c0_i32_0 = arith.constant 0 : i32
    return %c0_i32, %arg1 : i32, i32
  }
  func.func @transform_2(%arg0: i32, %arg1: i32) -> (i32, i32) {
    %c0_i32 = arith.constant 0 : i32
    %c0_i32_0 = arith.constant 0 : i32
    return %c0_i32, %arg1 : i32, i32
  }
  func.func @transform_3(%arg0: i32, %arg1: i32) -> (i32, i32) {
    %c0_i32 = arith.constant 0 : i32
    %c0_i32_0 = arith.constant 0 : i32
    return %c0_i32, %arg1 : i32, i32
  }
  func.func @transform_4(%arg0: i32, %arg1: i32) -> (i32, i32) {
    %c0_i32 = arith.constant 0 : i32
    %c0_i32_0 = arith.constant 0 : i32
    return %c0_i32, %arg1 : i32, i32
  }
  func.func @transform_5(%arg0: i32, %arg1: i32) -> (i32, i32, i32) {
    %c0_i32 = arith.constant 0 : i32
    %c0_i32_0 = arith.constant 0 : i32
    %c0_i32_1 = arith.constant 0 : i32
    %c0_i32_2 = arith.constant 0 : i32
    return %c0_i32, %c0_i32_0, %c0_i32_1 : i32, i32, i32
  }
  func.func @transform_6(%arg0: i32, %arg1: i32) -> (i32, i32, i32, i32) {
    %c0_i32 = arith.constant 0 : i32
    %c0_i32_0 = arith.constant 0 : i32
    %c0_i32_1 = arith.constant 0 : i32
    return %arg0, %c0_i32, %c0_i32_0, %arg1 : i32, i32, i32, i32
  }
}

</mosaic_0001>

<bundles_post_ra>
// kernel: tpu_custom_call.1
= control target key start
LH: loop header
LB: loop body
LE: loop exit
PB: predicated region body
PF: predicated region fallthrough
CT: control target
= control target key end

     0   :  { %s2270_s21 = smov 0   ;;  %s2272_s22 = smov 0   ;;  %s3811_s0 = inlined_call_operand.vmem [shape: f32[2,16,16,4], index: 0, kind: input, shape index: {}]   ;;  %s3812_s1 = inlined_call_operand.vmem [shape: f32[9,4], index: 1, kind: input, shape index: {}]   ;;  %s3813_s2 = inlined_call_operand.vmem [shape: f32[1,4], index: 2, kind: input, shape index: {}]   ;;  %s3814_s3 = inlined_call_operand.vmem [shape: f32[9,4], index: 3, kind: input, shape index: {}]   ;;  %s3815_s4 = inlined_call_operand.vmem [shape: f32[1,4], index: 4, kind: input, shape index: {}]   ;;  %s3816_s5 = inlined_call_operand.vmem [shape: f32[1,16,1], index: 5, kind: input, shape index: {}]   ;;  %s3817_s6 = inlined_call_operand.vmem [shape: f32[2,16,16,4], index: 6, kind: output, shape index: {}]  }
   0x1   :  { %s2274_s23 = smov 0  }
   0x2 LB: > { %s28_s24 = sadd.s32 1, %s2227_s22  ;;  %p2009_p0 = scmp.ge.s32.totalorder %s2231_s23, 1  ;;  %s2231_s23 = sphi %s2274_s23, %s16_s23   ;;  %s2227_s22 = sphi %s2272_s22, %s4143_s22   ;;  %s2223_s21 = sphi %s2270_s21, %s4142_s21  }
   0x3   : > { %p30_p1 = scmp.ge.s32.totalorder %s28_s24, 2  ;;  %p265_p2 = scmp.lt.s32.totalorder %s2231_s23, 3 }
   0x5   : > { %s4145_s24 = smov (%p30_p1, %s28_s24), 0  ;;  %p266_p3 = pnand %p2009_p0, %p265_p2 }
   0x7   : > { %269 = sbr.rel (%p266_p3) target bundleno = 289 (0x121), region = 44 }
   0xe   : > { %v1531_v0 = vld [vmem:[%s3816_s5] sm:$0xff]  ;;  %p315_p4 = scmp.lt.s32.totalorder %s2223_s21, 1  ;;  %vm377_vm0 = vcmask 31744   ;;  %v2233_v1 = vmov 0   ;;  %v2234_v2 = vmov 0.0   ;;  %vm380_vm1 = vcmask 25600  }
   0xf   : > { %2080 = vset.pattern.permute.xlu0 %v2233_v1  ;;  %378 = vst.msk [vmem:[#allocation2] sm:$0xff] %vm377_vm0, %v2234_v2  ;;  %379 = vst.msk [vmem:[#allocation2 + $0x8] sm:$0xff] %vm377_vm0, %v2234_v2  ;;  %vm386_vm2 = vcmask 24576   ;;  %v560_v3 = vlaneseq  ;;  %v1532_v4 = vld [vmem:[%s3816_s5 + $0x8] sm:$0xff]  ;;  %v2379_v15 = vld [vmem:[%s3812_s1] sm:$0xff]  ;;  %vm628_vm3 = vcmask 1046528  }
  0x10   : > { %923 = vst.msk [vmem:[#allocation3] sm:$0xff] %vm377_vm0, %v2234_v2  ;;  %1535 = vperm.xlu0 %2080, %v1531_v0   ;;  %s4147_s21 = smov (!%p315_p4, %s2223_s21), 1  ;;  %v2460_v36 = vld [vmem:[%s3814_s3] sm:$0xff]  ;;  %vm1369_vm4 = vcmask 1044480   ;;  %vm1386_vm5 = vcmask 1041408  }
  0x11   : > { %381 = vst.msk [vmem:[#allocation2 + $0x10] sm:$0x3] %vm380_vm1, %v2234_v2  ;;  %924 = vst.msk [vmem:[#allocation3 + $0x8] sm:$0x3] %vm380_vm1, %v2234_v2  ;;  %s2052_s29 = sshll.u32 %s4147_s21, 8  ;;  %v2335_v5 = vshrl.u32 %v560_v3, 7 }
  0x12   : > { %387 = vst.msk [vmem:[#allocation2] sm:$0x1] %vm386_vm2, %v2234_v2  ;;  %388 = vst.msk [vmem:[#allocation2 + $0x18] sm:$0x1] %vm386_vm2, %v2234_v2  ;;  %s2333_s8 = scalar_lea.vmem %s3811_s0, %s2052_s29  ;;  %s3692_s27 = scalar_lea.vmem %s3817_s6, %s2052_s29 }
  0x13   : > { %389 = vst.msk [vmem:[#allocation2 + $0x30] sm:$0x1] %vm386_vm2, %v2234_v2  ;;  %390 = vst.msk [vmem:[#allocation2 + $0x48] sm:$0x1] %vm386_vm2, %v2234_v2  ;;  %v2338_v6 = vld [vmem:[%s2333_s8] sm:$0xff]  ;;  %v2341_v7 = vld [vmem:[%s2333_s8 + $0x8] sm:$0xff] }
  0x14   : > { %391 = vst.msk [vmem:[#allocation2 + $0x60] sm:$0x1] %vm386_vm2, %v2234_v2  ;;  %392 = vst.msk [vmem:[#allocation2 + $0x78] sm:$0x1] %vm386_vm2, %v2234_v2  ;;  %1540 = vperm.xlu0 %2080, %v1532_v4   ;;  %v2344_v8 = vld [vmem:[%s2333_s8 + $0x10] sm:$0xff]  ;;  %v2347_v9 = vld [vmem:[%s2333_s8 + $0x18] sm:$0xff] }
  0x15   : > { %393 = vst.msk [vmem:[#allocation2 + $0x90] sm:$0x1] %vm386_vm2, %v2234_v2  ;;  %394 = vst.msk [vmem:[#allocation2 + $0xa8] sm:$0x1] %vm386_vm2, %v2234_v2  ;;  %v2350_v10 = vld [vmem:[%s2333_s8 + $0x20] sm:$0xff]  ;;  %v2353_v11 = vld [vmem:[%s2333_s8 + $0x28] sm:$0xff] }
  0x16   : > { %395 = vst.msk [vmem:[#allocation2 + $0xc0] sm:$0x1] %vm386_vm2, %v2234_v2  ;;  %396 = vst.msk [vmem:[#allocation2 + $0xd8] sm:$0x1] %vm386_vm2, %v2234_v2  ;;  %v2362_v12 = vld [vmem:[%s2333_s8 + $0x30] sm:$0xff]  ;;  %v2365_v13 = vld [vmem:[%s2333_s8 + $0x38] sm:$0xff] }
  0x17   : > { %397 = vst.msk [vmem:[#allocation2 + $0xf0] sm:$0x1] %vm386_vm2, %v2234_v2  ;;  %398 = vst.msk [vmem:[#allocation2 + $0x108] sm:$0x1] %vm386_vm2, %v2234_v2  ;;  %v2368_v14 = vld [vmem:[%s2333_s8 + $0x40] sm:$0xff]  ;;  %v2382_v16 = vld [vmem:[%s2333_s8 + $0x48] sm:$0xff] }
  0x18   : > { %399 = vst.msk [vmem:[#allocation2 + $0x120] sm:$0x1] %vm386_vm2, %v2234_v2  ;;  %400 = vst.msk [vmem:[#allocation2 + $0x138] sm:$0x1] %vm386_vm2, %v2234_v2  ;;  %v2385_v17 = vld [vmem:[%s2333_s8 + $0x50] sm:$0xff]  ;;  %v2388_v18 = vld [vmem:[%s2333_s8 + $0x58] sm:$0xff] }
  0x19   : > { %401 = vst.msk [vmem:[#allocation2 + $0x150] sm:$0x1] %vm386_vm2, %v2234_v2  ;;  %402 = vst.msk [vmem:[#allocation2 + $0x168] sm:$0x1] %vm386_vm2, %v2234_v2  ;;  %v2397_v19 = vsub.s32 2, %v2335_v5  ;;  %v2400_v20 = vld [vmem:[%s2333_s8 + $0x60] sm:$0xff] }
  0x1a   : > { %403 = vst.msk [vmem:[#allocation2 + $0x180] sm:$0x1] %vm386_vm2, %v2234_v2  ;;  %928 = vst.msk [vmem:[#allocation3] sm:$0x1] %vm386_vm2, %v2234_v2  ;;  %v2403_v21 = vld [vmem:[%s2333_s8 + $0x68] sm:$0xff]  ;;  %v2406_v22 = vld [vmem:[%s2333_s8 + $0x70] sm:$0xff] }
  0x1b   : > { %929 = vst.msk [vmem:[#allocation3 + $0x10] sm:$0x1] %vm386_vm2, %v2234_v2  ;;  %930 = vst.msk [vmem:[#allocation3 + $0x20] sm:$0x1] %vm386_vm2, %v2234_v2  ;;  %v2415_v23 = vsub.s32 0, %v2335_v5  ;;  %v2418_v24 = vsub.s32 3, %v2335_v5  ;;  %v2479_v40 = vrot.slane %v2379_v15, %v2397_v19  ;;  %v2570_v62 = vrot.slane %v2460_v36, %v2397_v19 }
  0x1c   : > { %931 = vst.msk [vmem:[#allocation3 + $0x30] sm:$0x1] %vm386_vm2, %v2234_v2  ;;  %932 = vst.msk [vmem:[#allocation3 + $0x40] sm:$0x1] %vm386_vm2, %v2234_v2  ;;  %v3820_v25 = vsub.s32 5, %v2335_v5  ;;  %v2422_v26 = vld [vmem:[%s2333_s8 + $0x78] sm:$0xff] }
  0x1d   : > { %933 = vst.msk [vmem:[#allocation3 + $0x50] sm:$0x1] %vm386_vm2, %v2234_v2  ;;  %934 = vst.msk [vmem:[#allocation3 + $0x60] sm:$0x1] %vm386_vm2, %v2234_v2  ;;  %v2425_v27 = vld [vmem:[%s2333_s8 + $0x80] sm:$0xff]  ;;  %v2428_v28 = vld [vmem:[%s2333_s8 + $0x88] sm:$0xff]  ;;  %v2498_v44 = vrot.slane %v2379_v15, %v2415_v23  ;;  %v2502_v45 = vrot.slane %v2379_v15, %v2418_v24  ;;  %v2562_v60 = vrot.slane %v2460_v36, %v2415_v23 }
  0x1e   : > { %935 = vst.msk [vmem:[#allocation3 + $0x70] sm:$0x1] %vm386_vm2, %v2234_v2  ;;  %936 = vst.msk [vmem:[#allocation3 + $0x80] sm:$0x1] %vm386_vm2, %v2234_v2  ;;  %v2437_v29 = vsub.s32 1, %v2335_v5  ;;  %v2440_v30 = vld [vmem:[%s2333_s8 + $0x90] sm:$0xff]  ;;  %v2507_v46 = vrot.slane %v2379_v15, %v3820_v25 }
  0x1f   : > { %3928 = vst [vmem:[#allocation4_spill] sm:$0xff] %v2335_v5  ;;  %3929 = vst [vmem:[#allocation5_spill] sm:$0xff] %v2338_v6  ;;  %v2443_v31 = vld [vmem:[%s2333_s8 + $0x98] sm:$0xff]  ;;  %v2446_v32 = vld [vmem:[%s2333_s8 + $0xa0] sm:$0xff]  ;;  %v3821_v33 = vsub.s32 4, %v2335_v5  ;;  %v3819_v34 = vsub.s32 6, %v2335_v5 }
  0x20   : > { %3930 = vst [vmem:[#allocation6_spill] sm:$0xff] %v2341_v7  ;;  %3931 = vst [vmem:[#allocation7_spill] sm:$0xff] %v2344_v8  ;;  %v3818_v35 = vsub.s32 7, %v2335_v5  ;;  %v2463_v37 = vld [vmem:[%s2333_s8 + $0xa8] sm:$0xff]  ;;  %v2466_v38 = vld [vmem:[%s2333_s8 + $0xb0] sm:$0xff]  ;;  %v2538_v53 = vrot.slane %v2379_v15, %v2437_v29  ;;  %v2566_v61 = vrot.slane %v2460_v36, %v2437_v29 }
  0x21   : > { %3932 = vst [vmem:[#allocation8_spill] sm:$0xff] %v2347_v9  ;;  %3933 = vst [vmem:[#allocation9_spill] sm:$0xff] %v2350_v10  ;;  %v2469_v39 = vld [vmem:[%s2333_s8 + $0xb8] sm:$0xff]  ;;  %v2482_v41 = vld [vmem:[%s2333_s8 + $0xc0] sm:$0xff]  ;;  %v2543_v54 = vrot.slane %v2379_v15, %v3821_v33  ;;  %v2548_v55 = vrot.slane %v2379_v15, %v3819_v34 }
  0x22   : > { %3934 = vst [vmem:[#allocation10_spill] sm:$0xff] %v2353_v11  ;;  %424 = vst.msk [vmem:[#allocation2 + $0x19] sm:$0xff] %vm377_vm0, %v2338_v6  ;;  %v2485_v42 = vld [vmem:[%s2333_s8 + $0xc8] sm:$0xff]  ;;  %v2488_v43 = vld [vmem:[%s2333_s8 + $0xd0] sm:$0xff]  ;;  %v2553_v56 = vrot.slane %v2379_v15, %v3818_v35 }
  0x23   : > { %425 = vst.msk [vmem:[#allocation2 + $0x21] sm:$0xff] %vm377_vm0, %v2341_v7  ;;  %426 = vst.msk [vmem:[#allocation2 + $0x31] sm:$0xff] %vm377_vm0, %v2344_v8  ;;  %v2510_v47 = vld [vmem:[%s2333_s8 + $0xd8] sm:$0xff]  ;;  %v2513_v48 = vld [vmem:[%s2333_s8 + $0xe0] sm:$0xff] }
  0x24   : > { %3935 = vst [vmem:[#allocation11_spill] sm:$0xff] %v2362_v12  ;;  %3936 = vst [vmem:[#allocation12_spill] sm:$0xff] %v2365_v13  ;;  %v2516_v49 = vld [vmem:[%s2333_s8 + $0xe8] sm:$0xff]  ;;  %v2525_v50 = vld [vmem:[%s2333_s8 + $0xf0] sm:$0xff] }
  0x25   : > { %3937 = vst [vmem:[#allocation13_spill] sm:$0xff] %v2368_v14  ;;  %427 = vst.msk [vmem:[#allocation2 + $0x39] sm:$0xff] %vm377_vm0, %v2347_v9  ;;  %v2528_v51 = vld [vmem:[%s2333_s8 + $0xf8] sm:$0xff]  ;;  %v459_v52 = vld [vmem:[#allocation2] ss:$2 sm:$0xff] }
  0x26   : > { %428 = vst.msk [vmem:[#allocation2 + $0x49] sm:$0xff] %vm377_vm0, %v2350_v10  ;;  %429 = vst.msk [vmem:[#allocation2 + $0x51] sm:$0xff] %vm377_vm0, %v2353_v11  ;;  %v461_v57 = vld [vmem:[#allocation2 + $0x10] ss:$2 sm:$0x1]  ;;  %v596_v59 = vmul.f32 %v2479_v40, %v459_v52  ;;  %v2575_v1 = vmul.f32 %v2498_v44, %v459_v52 }
  0x27   : > { %3938 = vst [vmem:[#allocation14_spill] sm:$0xff] %v2382_v16  ;;  %3939 = vst [vmem:[#allocation15_spill] sm:$0xff] %v2385_v17  ;;  %v597_v2 = vmul.f32 %v2479_v40, %v461_v57 }
  0x28   : > { %3940 = vst [vmem:[#allocation16_spill] sm:$0xff] %v2388_v18  ;;  %430 = vst.msk [vmem:[#allocation2 + $0x61] sm:$0xff] %vm377_vm0, %v2362_v12  ;;  %v629_v52 = vrot.slane %v596_v59, 1 }
  0x29   : > { %431 = vst.msk [vmem:[#allocation2 + $0x69] sm:$0xff] %vm377_vm0, %v2365_v13  ;;  %432 = vst.msk [vmem:[#allocation2 + $0x79] sm:$0xff] %vm377_vm0, %v2368_v14 }
  0x2a   : > { %3941 = vst [vmem:[#allocation17_spill] sm:$0xff] %v2397_v19  ;;  %3942 = vst [vmem:[#allocation18_spill] sm:$0xff] %v2400_v20  ;;  %v463_v58 = vld [vmem:[#allocation2 + $0x18] ss:$2 sm:$0xff] }
  0x2b   : > { %3943 = vst [vmem:[#allocation19_spill] sm:$0xff] %v2403_v21  ;;  %3944 = vst [vmem:[#allocation20_spill] sm:$0xff] %v2406_v22  ;;  %v465_v63 = vld [vmem:[#allocation2 + $0x28] ss:$2 sm:$0x1]  ;;  %v2579_v3 = vmul.f32 %v2502_v45, %v463_v58  ;;  %v2582_v4 = vmul.f32 %v2507_v46, %v463_v58 }
  0x2c   : > { %433 = vst.msk [vmem:[#allocation2 + $0x81] sm:$0xff] %vm377_vm0, %v2382_v16  ;;  %434 = vst.msk [vmem:[#allocation2 + $0x91] sm:$0xff] %vm377_vm0, %v2385_v17  ;;  %v2572_v0 = vld [vmem:[#allocation2 + $0x30] ss:$2 sm:$0xff]  ;;  %v2593_v33 = vmul.f32 %v2507_v46, %v465_v63 }
  0x2d   : > { %435 = vst.msk [vmem:[#allocation2 + $0x99] sm:$0xff] %vm377_vm0, %v2388_v18  ;;  %3945 = vst [vmem:[#allocation21_spill] sm:$0xff] %v2415_v23  ;;  %v2584_v15 = vld [vmem:[#allocation2 + $0x40] ss:$2 sm:$0x1]  ;;  %v2588_v34 = vmul.f32 %v2498_v44, %v2572_v0  ;;  %v598_v25 = vmul.f32 %v2479_v40, %v2572_v0 }
  0x2e   : > { %3946 = vst [vmem:[#allocation22_spill] sm:$0xff] %v2418_v24  ;;  %3947 = vst [vmem:[#allocation23_spill] sm:$0xff] %v2422_v26  ;;  %v471_v35 = vld [vmem:[#allocation2 + $0x48] ss:$2 sm:$0xff]  ;;  %v599_v58 = vmul.f32 %v2479_v40, %v2584_v15 }
  0x2f   : > { %3948 = vst [vmem:[#allocation24_spill] sm:$0xff] %v2425_v27  ;;  %3949 = vst [vmem:[#allocation25_spill] sm:$0xff] %v2428_v28  ;;  %v473_v57 = vld [vmem:[#allocation2 + $0x58] ss:$2 sm:$0x1] }
  0x30   : > { %436 = vst.msk [vmem:[#allocation2 + $0xa9] sm:$0xff] %vm377_vm0, %v2400_v20  ;;  %437 = vst.msk [vmem:[#allocation2 + $0xb1] sm:$0xff] %vm377_vm0, %v2403_v21 }
  0x31   : > { %438 = vst.msk [vmem:[#allocation2 + $0xc1] sm:$0xff] %vm377_vm0, %v2406_v22  ;;  %3950 = vst [vmem:[#allocation26_spill] sm:$0xff] %v2437_v29 }
  0x32   : > { %3951 = vst [vmem:[#allocation27_spill] sm:$0xff] %v2440_v30  ;;  %3952 = vst [vmem:[#allocation28_spill] sm:$0xff] %v2443_v31 }
  0x33   : > { %3953 = vst [vmem:[#allocation29_spill] sm:$0xff] %v2446_v32  ;;  %439 = vst.msk [vmem:[#allocation2 + $0xc9] sm:$0xff] %vm377_vm0, %v2422_v26 }
  0x34   : > { %440 = vst.msk [vmem:[#allocation2 + $0xd9] sm:$0xff] %vm377_vm0, %v2425_v27  ;;  %441 = vst.msk [vmem:[#allocation2 + $0xe1] sm:$0xff] %vm377_vm0, %v2428_v28 }
  0x35   : > { %3954 = vst [vmem:[#allocation30_spill] sm:$0xff] %v2460_v36  ;;  %3955 = vst [vmem:[#allocation31_spill] sm:$0xff] %v2463_v37 }
  0x36   : > { %3956 = vst [vmem:[#allocation32_spill] sm:$0xff] %v2466_v38  ;;  %3957 = vst [vmem:[#allocation33_spill] sm:$0xff] %v2469_v39 }
  0x37   : > { %442 = vst.msk [vmem:[#allocation2 + $0xf1] sm:$0xff] %vm377_vm0, %v2440_v30  ;;  %443 = vst.msk [vmem:[#allocation2 + $0xf9] sm:$0xff] %vm377_vm0, %v2443_v31  ;;  %v2626_v31 = vld [vmem:[#allocation2 + $0xa0] ss:$2 sm:$0x1] }
  0x38   : > { %444 = vst.msk [vmem:[#allocation2 + $0x109] sm:$0xff] %vm377_vm0, %v2446_v32  ;;  %3958 = vst [vmem:[#allocation34_spill] sm:$0xff] %v2482_v41  ;;  %v487_v30 = vld [vmem:[#allocation2 + $0xa8] ss:$2 sm:$0xff] }
  0x39   : > { %3959 = vst [vmem:[#allocation35_spill] sm:$0xff] %v2485_v42  ;;  %3960 = vst [vmem:[#allocation36_spill] sm:$0xff] %v2488_v43  ;;  %v2645_v22 = vmul.f32 %v2502_v45, %v487_v30  ;;  %v2677_v9 = vmul.f32 %v2507_v46, %v487_v30 }
  0x3a   : > { %445 = vst.msk [vmem:[#allocation2 + $0x111] sm:$0xff] %vm377_vm0, %v2463_v37  ;;  %446 = vst.msk [vmem:[#allocation2 + $0x121] sm:$0xff] %vm377_vm0, %v2466_v38  ;;  %v633_v37 = vrot.slane %v599_v58, 1  ;;  %v2647_v21 = vld [vmem:[#allocation2 + $0xd0] ss:$2 sm:$0x1] }
  0x3b   : > { %447 = vst.msk [vmem:[#allocation2 + $0x129] sm:$0xff] %vm377_vm0, %v2469_v39  ;;  %3961 = vst [vmem:[#allocation37_spill] sm:$0xff] %v2510_v47  ;;  %v2616_v39 = vld [vmem:[#allocation2 + $0x90] ss:$2 sm:$0xff] }
  0x3c   : > { %3962 = vst [vmem:[#allocation38_spill] sm:$0xff] %v2513_v48  ;;  %3963 = vst [vmem:[#allocation39_spill] sm:$0xff] %v2516_v49  ;;  %v495_v20 = vld [vmem:[#allocation2 + $0xd8] ss:$2 sm:$0xff] }
  0x3d   : > { %448 = vst.msk [vmem:[#allocation2 + $0x139] sm:$0xff] %vm377_vm0, %v2482_v41  ;;  %449 = vst.msk [vmem:[#allocation2 + $0x141] sm:$0xff] %vm377_vm0, %v2485_v42  ;;  %v632_v42 = vrot.slane %v598_v25, 1  ;;  %v2614_v41 = vmul.f32 %v2507_v46, %v473_v57  ;;  %v2630_v25 = vmul.f32 %v2498_v44, %v2616_v39  ;;  %v602_v57 = vmul.f32 %v2479_v40, %v2616_v39 }
  0x3e   : > { %450 = vst.msk [vmem:[#allocation2 + $0x151] sm:$0xff] %vm377_vm0, %v2488_v43  ;;  %3964 = vst [vmem:[#allocation40_spill] sm:$0xff] %v2525_v50  ;;  %v479_v43 = vld [vmem:[#allocation2 + $0x78] ss:$2 sm:$0xff]  ;;  %v2666_v13 = vmul.f32 %v2502_v45, %v495_v20 }
  0x3f   : > { %3965 = vst [vmem:[#allocation41_spill] sm:$0xff] %v2528_v51  ;;  %451 = vst.msk [vmem:[#allocation2 + $0x159] sm:$0xff] %vm377_vm0, %v2510_v47  ;;  %v2605_v47 = vld [vmem:[#allocation2 + $0x70] ss:$2 sm:$0x1]  ;;  %v2624_v32 = vmul.f32 %v2502_v45, %v479_v43  ;;  %v2635_v27 = vmul.f32 %v2507_v46, %v479_v43  ;;  %v2642_v58 = vsel %vm628_vm3, %v632_v42, %v633_v37  ;;  %v638_v18 = vrot.slane %v602_v57, 1 }
  0x40   : > { %452 = vst.msk [vmem:[#allocation2 + $0x169] sm:$0xff] %vm377_vm0, %v2513_v48  ;;  %453 = vst.msk [vmem:[#allocation2 + $0x171] sm:$0xff] %vm377_vm0, %v2516_v49  ;;  %v2600_v49 = vmul.f32 %v2502_v45, %v471_v35  ;;  %v2603_v48 = vmul.f32 %v2507_v46, %v471_v35  ;;  %v601_v35 = vmul.f32 %v2479_v40, %v2605_v47  ;;  %v489_v37 = vld [vmem:[#allocation2 + $0xb8] ss:$2 sm:$0x1] }
  0x41   : > { %3966 = vst [vmem:[#allocation42_spill] sm:$0xff] %v2548_v55  ;;  %3967 = vst [vmem:[#allocation43_spill] sm:$0xff] %v2553_v56  ;;  %v2658_v42 = vld [vmem:[#allocation2 + $0xf0] ss:$2 sm:$0xff]  ;;  %v2698_v36 = vmul.f32 %v2507_v46, %v489_v37 }
  0x42   : > { %454 = vst.msk [vmem:[#allocation2 + $0x181] sm:$0xff] %vm377_vm0, %v2525_v50  ;;  %455 = vst.msk [vmem:[#allocation2 + $0x189] sm:$0xff] %vm377_vm0, %v2528_v51  ;;  %v2595_v51 = vld [vmem:[#allocation2 + $0x60] ss:$2 sm:$0xff]  ;;  %v630_v50 = vrot.slane %v597_v2, 1  ;;  %v636_v26 = vrot.slane %v601_v35, 1  ;;  %v605_v35 = vmul.f32 %v2479_v40, %v2647_v21  ;;  %v606_v57 = vmul.f32 %v2479_v40, %v2658_v42 }
  0x43   : > { %3968 = vst [vmem:[#allocation44_spill] sm:$0xff] %v2562_v60  ;;  %3969 = vst [vmem:[#allocation45_spill] sm:$0xff] %v2566_v61  ;;  %v2609_v59 = vmul.f32 %v2498_v44, %v2595_v51  ;;  %v600_v63 = vmul.f32 %v2479_v40, %v2595_v51  ;;  %v481_v2 = vld [vmem:[#allocation2 + $0x88] ss:$2 sm:$0x1] }
  0x44   : > { %3970 = vst [vmem:[#allocation46_spill] sm:$0xff] %v2570_v62  ;;  %3971 = vst [vmem:[#allocation47_spill] sm:$0xff] %v2572_v0  ;;  %v2621_v38 = vsel %vm628_vm3, %v629_v52, %v630_v50  ;;  %v2637_v50 = vld [vmem:[#allocation2 + $0xc0] ss:$2 sm:$0xff]  ;;  %v603_v52 = vmul.f32 %v2479_v40, %v2626_v31  ;;  %v2656_v17 = vmul.f32 %v2507_v46, %v481_v2  ;;  %v642_v6 = vrot.slane %v605_v35, 1 }
  0x45   : > { %3972 = vst [vmem:[#allocation48_spill] sm:$0xff] %v2584_v15  ;;  %3973 = vst [vmem:[#allocation49_spill] sm:$0xff] %v2595_v51  ;;  %v635_v28 = vrot.slane %v600_v63, 1  ;;  %v2651_v63 = vmul.f32 %v2498_v44, %v2637_v50  ;;  %v604_v43 = vmul.f32 %v2479_v40, %v2637_v50  ;;  %v2668_v12 = vld [vmem:[#allocation2 + $0x100] ss:$2 sm:$0x1]  ;;  %v2672_v2 = vmul.f32 %v2498_v44, %v2658_v42 }
  0x46   : > { %3974 = vst [vmem:[#allocation50_spill] sm:$0xff] %v2605_v47  ;;  %3975 = vst [vmem:[#allocation51_spill] sm:$0xff] %v2616_v39  ;;  %v639_v14 = vrot.slane %v603_v52, 1  ;;  %v503_v11 = vld [vmem:[#allocation2 + $0x108] ss:$2 sm:$0xff]  ;;  %v607_v8 = vmul.f32 %v2479_v40, %v2668_v12  ;;  %v644_v5 = vrot.slane %v606_v57, 1 }
  0x47   : > { %3976 = vst [vmem:[#allocation52_spill] sm:$0xff] %v2626_v31  ;;  %3977 = vst [vmem:[#allocation53_spill] sm:$0xff] %v2637_v50  ;;  %v2663_v16 = vsel %vm628_vm3, %v635_v28, %v636_v26  ;;  %v641_v10 = vrot.slane %v604_v43, 1  ;;  %v497_v26 = vld [vmem:[#allocation2 + $0xe8] ss:$2 sm:$0x1]  ;;  %v2687_v19 = vmul.f32 %v2502_v45, %v503_v11  ;;  %v2717_v31 = vmul.f32 %v2507_v46, %v495_v20 }
  0x48   : > { %3978 = vst [vmem:[#allocation54_spill] sm:$0xff] %v2647_v21  ;;  %3979 = vst [vmem:[#allocation55_spill] sm:$0xff] %v2658_v42  ;;  %v505_v28 = vld [vmem:[#allocation2 + $0x118] ss:$2 sm:$0x1]  ;;  %v2684_v7 = vsel %vm628_vm3, %v638_v18, %v639_v14  ;;  %v645_v62 = vrot.slane %v607_v8, 1  ;;  %v2729_v56 = vmul.f32 %v2507_v46, %v503_v11 }
  0x49   : > { %3980 = vst [vmem:[#allocation56_spill] sm:$0xff] %v2668_v12  ;;  %v2679_v52 = vld [vmem:[#allocation2 + $0x120] ss:$2 sm:$0xff]  ;;  %v2689_v29 = vld [vmem:[#allocation2 + $0x130] ss:$2 sm:$0x1]  ;;  %v2705_v24 = vsel %vm628_vm3, %v641_v10, %v642_v6  ;;  %v2732_v20 = vmul.f32 %v2507_v46, %v505_v28 }
  0x4a   : > { %3981 = vst [vmem:[#allocation57_spill] sm:$0xff] %v2679_v52  ;;  %3982 = vst [vmem:[#allocation58_spill] sm:$0xff] %v2689_v29  ;;  %v511_v43 = vld [vmem:[#allocation2 + $0x138] ss:$2 sm:$0xff]  ;;  %v2693_v30 = vmul.f32 %v2498_v44, %v2679_v52  ;;  %v608_v23 = vmul.f32 %v2479_v40, %v2679_v52  ;;  %v609_v35 = vmul.f32 %v2479_v40, %v2689_v29  ;;  %v519_v12 = vld [vmem:[#allocation2 + $0x168] ss:$2 sm:$0xff] }
  0x4b   : > { %v513_v14 = vld [vmem:[#allocation2 + $0x148] ss:$2 sm:$0x1]  ;;  %v2700_v18 = vld [vmem:[#allocation2 + $0x150] ss:$2 sm:$0xff]  ;;  %v2708_v61 = vmul.f32 %v2502_v45, %v511_v43  ;;  %v646_v8 = vsel %vm628_vm3, %v644_v5, %v645_v62  ;;  %v2723_v29 = vmul.f32 %v2502_v45, %v519_v12  ;;  %v2739_v62 = vmul.f32 %v2507_v46, %v511_v43 }
  0x4c   : > { %3983 = vst [vmem:[#allocation59_spill] sm:$0xff] %v2700_v18  ;;  %v2710_v60 = vld [vmem:[#allocation2 + $0x160] ss:$2 sm:$0x1]  ;;  %v571_v37 = vmul.f32 %v2498_v44, %v2700_v18  ;;  %v610_v57 = vmul.f32 %v2479_v40, %v2700_v18  ;;  %v647_v21 = vrot.slane %v608_v23, 1  ;;  %v648_v10 = vrot.slane %v609_v35, 1 }
  0x4d   : > { %3984 = vst [vmem:[#allocation60_spill] sm:$0xff] %v2710_v60  ;;  %v611_v6 = vmul.f32 %v2479_v40, %v2710_v60  ;;  %v527_v47 = vld [vmem:[#allocation2 + $0x1] ss:$2 sm:$0xff]  ;;  %v2726_v44 = vmul.f32 %v2507_v46, %v497_v26  ;;  %v2734_v18 = vld [vmem:[#allocation2 + $0x31] ss:$2 sm:$0xff]  ;;  %v2742_v26 = vmul.f32 %v2507_v46, %v513_v14 }
  0x4e   : > { %v650_v15 = vrot.slane %v610_v57, 1  ;;  %v529_v23 = vld [vmem:[#allocation2 + $0x19] ss:$2 sm:$0xff]  ;;  %3985 = vst [vmem:[#allocation61_spill] sm:$0xff] %v2734_v18  ;;  %v533_v40 = vld [vmem:[#allocation2 + $0x49] ss:$2 sm:$0xff]  ;;  %v576_v5 = vmul.f32 %v2538_v53, %v527_v47  ;;  %v649_v45 = vsel %vm628_vm3, %v647_v21, %v648_v10  ;;  %v577_v28 = vmul.f32 %v2538_v53, %v2734_v18 }
  0x4f   : > { %3986 = vst [vmem:[#allocation62_spill] sm:$0xff] %v2742_v26  ;;  %v2744_v35 = vld [vmem:[#allocation2 + $0x61] ss:$2 sm:$0xff]  ;;  %v2746_v57 = vld [vmem:[#allocation2 + $0x91] ss:$2 sm:$0xff]  ;;  %v685_v60 = vmul.f32 %v2543_v54, %v529_v23  ;;  %v686_v47 = vmul.f32 %v2543_v54, %v533_v40  ;;  %v2753_v21 = vmul.f32 %v2507_v46, %v519_v12 }
  0x50   : > { %3987 = vst [vmem:[#allocation63_spill] sm:$0xff] %v2744_v35  ;;  %v537_v11 = vld [vmem:[#allocation2 + $0x79] ss:$2 sm:$0xff]  ;;  %3988 = vst [vmem:[#allocation64_spill] sm:$0xff] %v2746_v57  ;;  %v541_v43 = vld [vmem:[#allocation2 + $0xa9] ss:$2 sm:$0xff]  ;;  %v578_v52 = vmul.f32 %v2538_v53, %v2744_v35  ;;  %v579_v42 = vmul.f32 %v2538_v53, %v2746_v57  ;;  %v584_v50 = vadd.f32 %v576_v5, %v2575_v1 }
  0x51   : > { %3989 = vst [vmem:[#allocation65_spill] sm:$0xff] %v2753_v21  ;;  %v2755_v10 = vld [vmem:[#allocation2 + $0xc1] ss:$2 sm:$0xff]  ;;  %v687_v18 = vmul.f32 %v2543_v54, %v537_v11  ;;  %v2763_v23 = vld [vmem:[#allocation2 + $0xf1] ss:$2 sm:$0xff]  ;;  %v585_v39 = vadd.f32 %v577_v28, %v2588_v34  ;;  %v688_v51 = vmul.f32 %v2543_v54, %v541_v43  ;;  %v651_v43 = vrot.slane %v611_v6, 1 }
  0x52   : > { %3990 = vst [vmem:[#allocation66_spill] sm:$0xff] %v2755_v10  ;;  %v545_v14 = vld [vmem:[#allocation2 + $0xd9] ss:$2 sm:$0xff]  ;;  %3991 = vst [vmem:[#allocation67_spill] sm:$0xff] %v2763_v23  ;;  %v580_v12 = vmul.f32 %v2538_v53, %v2755_v10  ;;  %v581_v1 = vmul.f32 %v2538_v53, %v2763_v23  ;;  %v586_v11 = vadd.f32 %v578_v52, %v2609_v59  ;;  %v549_v0 = vld [vmem:[#allocation2 + $0x109] ss:$2 sm:$0xff] }
  0x53   : > { %v2765_v40 = vld [vmem:[#allocation2 + $0x121] ss:$2 sm:$0xff]  ;;  %v689_v35 = vmul.f32 %v2543_v54, %v545_v14  ;;  %v2772_v55 = vld [vmem:[#allocation2 + $0x151] ss:$2 sm:$0xff]  ;;  %v587_v57 = vadd.f32 %v579_v42, %v2630_v25  ;;  %v661_v14 = vadd.f32 %v2621_v38, %v584_v50  ;;  %v652_v42 = vsel %vm628_vm3, %v650_v15, %v651_v43 }
  0x54   : > { %3992 = vst [vmem:[#allocation68_spill] sm:$0xff] %v2765_v40  ;;  %v582_v5 = vmul.f32 %v2538_v53, %v2765_v40  ;;  %v553_v10 = vld [vmem:[#allocation2 + $0x139] ss:$2 sm:$0xff]  ;;  %v583_v34 = vmul.f32 %v2538_v53, %v2772_v55  ;;  %v588_v28 = vadd.f32 %v580_v12, %v2651_v63  ;;  %v557_v21 = vld [vmem:[#allocation2 + $0x169] ss:$2 sm:$0xff]  ;;  %v589_v23 = vadd.f32 %v581_v1, %v2672_v2 }
  0x55   : > { %v662_v40 = vadd.f32 %v2642_v58, %v585_v39  ;;  %v663_v59 = vadd.f32 %v2663_v16, %v586_v11  ;;  %v664_v52 = vadd.f32 %v2684_v7, %v587_v57  ;;  %v521_v63 = vld [vmem:[#allocation2 + $0x178] ss:$2 sm:$0x1]  ;;  %v690_v38 = vmul.f32 %v2543_v54, %v549_v0 }
  0x56   : > { %v590_v26 = vadd.f32 %v582_v5, %v2693_v30  ;;  %v591_v25 = vadd.f32 %v583_v34, %v571_v37  ;;  %v665_v53 = vadd.f32 %v2705_v24, %v588_v28  ;;  %v666_v6 = vadd.f32 %v646_v8, %v589_v23  ;;  %v523_v5 = vld [vmem:[#allocation2 + $0x180] ss:$2 sm:$0xff] }
  0x57   : > { %v691_v50 = vmul.f32 %v2543_v54, %v553_v10  ;;  %v692_v30 = vmul.f32 %v2543_v54, %v557_v21  ;;  %v693_v39 = vadd.f32 %v685_v60, %v2579_v3  ;;  %v694_v16 = vadd.f32 %v686_v47, %v2600_v49  ;;  %v3993_v3 = vld [vmem:[#allocation62_spill] sm:$0xff] }
  0x58   : > { %v667_v12 = vadd.f32 %v649_v45, %v590_v26  ;;  %v668_v2 = vadd.f32 %v652_v42, %v591_v25  ;;  %v695_v15 = vadd.f32 %v687_v18, %v2624_v32  ;;  %v696_v7 = vadd.f32 %v688_v51, %v2645_v22 }
  0x59   : > { %v697_v24 = vadd.f32 %v689_v35, %v2666_v13  ;;  %v698_v58 = vadd.f32 %v690_v38, %v2687_v19  ;;  %v699_v37 = vadd.f32 %v691_v50, %v2708_v61  ;;  %v700_v0 = vadd.f32 %v692_v30, %v2723_v29  ;;  %v3995_v38 = vld [vmem:[#allocation47_spill] sm:$0xff]  ;;  %v3996_v50 = vld [vmem:[#allocation42_spill] sm:$0xff] }
  0x5a   : > { %v720_v8 = vmul.f32 %v2507_v46, %v521_v63  ;;  %v737_v54 = vrot.slane %v2582_v4, 1  ;;  %v738_v60 = vrot.slane %v2593_v33, 1  ;;  %v740_v49 = vrot.slane %v2603_v48, 1  ;;  %v3994_v4 = vld [vmem:[#allocation65_spill] sm:$0xff] }
  0x5b   : > { %v741_v32 = vrot.slane %v2614_v41, 1  ;;  %v743_v22 = vrot.slane %v2635_v27, 1  ;;  %v744_v13 = vrot.slane %v2656_v17, 1  ;;  %v746_v19 = vrot.slane %v2677_v9, 1 }
  0x5c   : > { %v747_v51 = vrot.slane %v2698_v36, 1  ;;  %v749_v29 = vrot.slane %v2717_v31, 1  ;;  %v739_v46 = vsel %vm628_vm3, %v737_v54, %v738_v60  ;;  %v750_v33 = vrot.slane %v2726_v44, 1  ;;  %v2014_v54 = vld [vmem:[%s3812_s1 + $0x8] ss:$0 sm:$0xff] }
  0x5d   : > { %v742_v61 = vsel %vm628_vm3, %v740_v49, %v741_v32  ;;  %v752_v48 = vrot.slane %v2729_v56, 1  ;;  %v745_v41 = vsel %vm628_vm3, %v743_v22, %v744_v13  ;;  %v753_v17 = vrot.slane %v2732_v20, 1  ;;  %v4005_v60 = vld [vmem:[#allocation63_spill] sm:$0xff]  ;;  %v4006_v32 = vld [vmem:[#allocation64_spill] sm:$0xff]  ;;  %v4007_v13 = vld [vmem:[#allocation66_spill] sm:$0xff] }
  0x5e   : > { %v748_v27 = vsel %vm628_vm3, %v746_v19, %v747_v51  ;;  %v755_v9 = vrot.slane %v2739_v62, 1  ;;  %v751_v36 = vsel %vm628_vm3, %v749_v29, %v750_v33  ;;  %v756_v31 = vrot.slane %v3993_v3, 1  ;;  %v4008_v51 = vld [vmem:[#allocation67_spill] sm:$0xff] }
  0x5f   : > { %v758_v18 = vrot.slane %v3994_v4, 1  ;;  %v759_v45 = vrot.slane %v720_v8, 1  ;;  %v754_v26 = vsel %vm628_vm3, %v752_v48, %v753_v17  ;;  %v769_v44 = vadd.f32 %v739_v46, %v693_v39  ;;  %v3997_v39 = vld [vmem:[#allocation49_spill] sm:$0xff]  ;;  %v4009_v46 = vld [vmem:[#allocation68_spill] sm:$0xff] }
  0x60   : > { %v770_v35 = vadd.f32 %v742_v61, %v694_v16  ;;  %v771_v56 = vadd.f32 %v745_v41, %v695_v15  ;;  %v757_v57 = vsel %vm628_vm3, %v755_v9, %v756_v31  ;;  %v772_v21 = vadd.f32 %v748_v27, %v696_v7  ;;  %v3998_v16 = vld [vmem:[#allocation51_spill] sm:$0xff] }
  0x61   : > { %v760_v47 = vsel %vm628_vm3, %v758_v18, %v759_v45  ;;  %v773_v20 = vadd.f32 %v751_v36, %v697_v24  ;;  %v774_v10 = vadd.f32 %v754_v26, %v698_v58  ;;  %v775_v62 = vadd.f32 %v757_v57, %v699_v37  ;;  %v4000_v15 = vld [vmem:[#allocation55_spill] sm:$0xff]  ;;  %v4003_v37 = vld [vmem:[#allocation61_spill] sm:$0xff]  ;;  %v525_v45 = vld [vmem:[#allocation2 + $0x190] ss:$2 sm:$0x1] }
  0x62   : > { %v776_v23 = vadd.f32 %v760_v47, %v700_v0  ;;  %v2826_v1 = vadd.f32 %v769_v44, %v661_v14  ;;  %v2828_v11 = vadd.f32 %v770_v35, %v662_v40  ;;  %v2830_v34 = vadd.f32 %v771_v56, %v663_v59  ;;  %v559_v14 = vld [vmem:[#allocation2 + $0x181] ss:$2 sm:$0xff]  ;;  %v4010_v26 = vld [vmem:[#allocation48_spill] sm:$0xff] }
  0x63   : > { %v2832_v28 = vadd.f32 %v772_v21, %v664_v52  ;;  %v2834_v43 = vadd.f32 %v773_v20, %v665_v53  ;;  %v2836_v25 = vadd.f32 %v774_v10, %v666_v6  ;;  %v2838_v42 = vadd.f32 %v775_v62, %v667_v12  ;;  %v3999_v52 = vld [vmem:[#allocation53_spill] sm:$0xff]  ;;  %v4002_v7 = vld [vmem:[#allocation59_spill] sm:$0xff]  ;;  %v4011_v56 = vld [vmem:[#allocation50_spill] sm:$0xff] }
  0x64   : > { %v2840_v63 = vadd.f32 %v776_v23, %v668_v2  ;;  %v789_v30 = vmul.f32 %v3996_v50, %v3995_v38  ;;  %v790_v40 = vmul.f32 %v3996_v50, %v3997_v39  ;;  %v791_v59 = vmul.f32 %v3996_v50, %v3998_v16  ;;  %v4001_v12 = vld [vmem:[#allocation57_spill] sm:$0xff]  ;;  %v4004_v0 = vld [vmem:[#allocation43_spill] sm:$0xff]  ;;  %v4012_v47 = vld [vmem:[#allocation52_spill] sm:$0xff] }
  0x65   : > { %v792_v53 = vmul.f32 %v3996_v50, %v3999_v52  ;;  %v793_v6 = vmul.f32 %v3996_v50, %v4000_v15  ;;  %v794_v2 = vmul.f32 %v3996_v50, %v4001_v12  ;;  %v795_v24 = vmul.f32 %v3996_v50, %v4002_v7  ;;  %v4013_v10 = vld [vmem:[#allocation54_spill] sm:$0xff] }
  0x66   : > { %v796_v58 = vmul.f32 %v3996_v50, %v523_v5  ;;  %v801_v8 = vmul.f32 %v4004_v0, %v4003_v37  ;;  %v802_v49 = vmul.f32 %v4004_v0, %v4005_v60  ;;  %v803_v22 = vmul.f32 %v4004_v0, %v4006_v32  ;;  %v4014_v50 = vld [vmem:[#allocation56_spill] sm:$0xff] }
  0x67   : > { %v804_v19 = vmul.f32 %v4004_v0, %v4007_v13  ;;  %v805_v29 = vmul.f32 %v4004_v0, %v4008_v51  ;;  %v806_v61 = vmul.f32 %v4004_v0, %v4009_v46  ;;  %v807_v33 = vmul.f32 %v4004_v0, %v2772_v55 }
  0x68   : > { %v808_v48 = vmul.f32 %v4004_v0, %v559_v14  ;;  %v809_v41 = vadd.f32 %v801_v8, %v789_v30  ;;  %v810_v27 = vadd.f32 %v802_v49, %v790_v40  ;;  %v811_v17 = vadd.f32 %v803_v22, %v791_v59  ;;  %v4015_v14 = vld [vmem:[#allocation58_spill] sm:$0xff]  ;;  %v4016_v59 = vld [vmem:[#allocation60_spill] sm:$0xff] }
  0x69   : > { %v812_v9 = vadd.f32 %v804_v19, %v792_v53  ;;  %v813_v36 = vadd.f32 %v805_v29, %v793_v6  ;;  %v814_v3 = vadd.f32 %v806_v61, %v794_v2  ;;  %v815_v31 = vadd.f32 %v807_v33, %v795_v24 }
  0x6a   : > { %v816_v4 = vadd.f32 %v808_v48, %v796_v58  ;;  %v821_v18 = vmul.f32 %v2014_v54, %v3995_v38  ;;  %v822_v44 = vmul.f32 %v2014_v54, %v4010_v26  ;;  %v823_v35 = vmul.f32 %v2014_v54, %v3997_v39 }
  0x6b   : > { %v824_v57 = vmul.f32 %v2014_v54, %v4011_v56  ;;  %v825_v55 = vmul.f32 %v2014_v54, %v3998_v16  ;;  %v826_v21 = vmul.f32 %v2014_v54, %v4012_v47  ;;  %v827_v20 = vmul.f32 %v2014_v54, %v3999_v52 }
  0x6c   : > { %v828_v62 = vmul.f32 %v2014_v54, %v4013_v10  ;;  %v829_v23 = vmul.f32 %v2014_v54, %v4000_v15  ;;  %v830_v30 = vmul.f32 %v2014_v54, %v4014_v50  ;;  %v831_v38 = vmul.f32 %v2014_v54, %v4001_v12 }
  0x6d   : > { %v832_v40 = vmul.f32 %v2014_v54, %v4015_v14  ;;  %v833_v39 = vmul.f32 %v2014_v54, %v4002_v7  ;;  %v834_v53 = vmul.f32 %v2014_v54, %v4016_v59  ;;  %v835_v6 = vmul.f32 %v2014_v54, %v523_v5 }
  0x6e   : > { %v836_v16 = vmul.f32 %v2014_v54, %v525_v45  ;;  %v853_v2 = vrot.slane %v821_v18, 1  ;;  %v854_v24 = vrot.slane %v822_v44, 1  ;;  %v856_v58 = vrot.slane %v823_v35, 1  ;;  %v2015_v45 = vld [vmem:[%s3813_s2] ss:$0 sm:$0xff] }
  0x6f   : > { %v857_v52 = vrot.slane %v824_v57, 1  ;;  %v859_v37 = vrot.slane %v825_v55, 1  ;;  %v860_v0 = vrot.slane %v826_v21, 1  ;;  %v862_v8 = vrot.slane %v827_v20, 1 }
  0x70   : > { %v863_v15 = vrot.slane %v828_v62, 1  ;;  %v865_v60 = vrot.slane %v829_v23, 1  ;;  %v855_v49 = vsel %vm628_vm3, %v853_v2, %v854_v24  ;;  %v866_v32 = vrot.slane %v830_v30, 1 }
  0x71   : > { %v858_v12 = vsel %vm628_vm3, %v856_v58, %v857_v52  ;;  %v868_v22 = vrot.slane %v831_v38, 1  ;;  %v861_v7 = vsel %vm628_vm3, %v859_v37, %v860_v0  ;;  %v869_v54 = vrot.slane %v832_v40, 1  ;;  %v978_v38 = vld [vmem:[#allocation3 + $0x1] ss:$2 sm:$0xf]  ;;  %v4020_v52 = vld [vmem:[#allocation22_spill] sm:$0xff] }
  0x72   : > { %v864_v5 = vsel %vm628_vm3, %v862_v8, %v863_v15  ;;  %v871_v13 = vrot.slane %v833_v39, 1  ;;  %v867_v19 = vsel %vm628_vm3, %v865_v60, %v866_v32  ;;  %v872_v51 = vrot.slane %v834_v53, 1  ;;  %v4018_v53 = vld [vmem:[#allocation45_spill] sm:$0xff]  ;;  %v4021_v37 = vld [vmem:[#allocation30_spill] sm:$0xff]  ;;  %v4022_v8 = vld [vmem:[#allocation4_spill] sm:$0xff] }
  0x73   : > { %v874_v29 = vrot.slane %v835_v6, 1  ;;  %v875_v46 = vrot.slane %v836_v16, 1  ;;  %v870_v61 = vsel %vm628_vm3, %v868_v22, %v869_v54  ;;  %v885_v33 = vadd.f32 %v855_v49, %v809_v41  ;;  %v4019_v16 = vld [vmem:[#allocation46_spill] sm:$0xff] }
  0x74   : > { %v886_v48 = vadd.f32 %v858_v12, %v810_v27  ;;  %v887_v18 = vadd.f32 %v861_v7, %v811_v17  ;;  %v873_v26 = vsel %vm628_vm3, %v871_v13, %v872_v51  ;;  %v888_v35 = vadd.f32 %v864_v5, %v812_v9 }
  0x75   : > { %v876_v44 = vsel %vm628_vm3, %v874_v29, %v875_v46  ;;  %v889_v56 = vadd.f32 %v867_v19, %v813_v36  ;;  %v890_v57 = vadd.f32 %v870_v61, %v814_v3  ;;  %v891_v55 = vadd.f32 %v873_v26, %v815_v31 }
  0x76   : > { %v892_v47 = vadd.f32 %v876_v44, %v816_v4  ;;  %v893_v21 = vadd.f32 %v885_v33, %v2826_v1  ;;  %v894_v20 = vadd.f32 %v886_v48, %v2828_v11  ;;  %v895_v41 = vadd.f32 %v887_v18, %v2830_v34  ;;  %v960_v1 = vld [vmem:[#allocation3] ss:$2 sm:$0x1f] }
  0x77   : > { %v896_v27 = vadd.f32 %v888_v35, %v2832_v28  ;;  %v897_v17 = vadd.f32 %v889_v56, %v2834_v43  ;;  %v898_v10 = vadd.f32 %v890_v57, %v2836_v25  ;;  %v899_v62 = vadd.f32 %v891_v55, %v2838_v42 }
  0x78   : > { %v900_v9 = vadd.f32 %v892_v47, %v2840_v63  ;;  %v907_v36 = vadd.f32 %v2015_v45, %v893_v21  ;;  %v908_v3 = vadd.f32 %v2015_v45, %v894_v20  ;;  %v909_v31 = vadd.f32 %v2015_v45, %v895_v41  ;;  %v4017_v63 = vld [vmem:[#allocation44_spill] sm:$0xff] }
  0x79   : > { %v910_v4 = vadd.f32 %v2015_v45, %v896_v27  ;;  %v911_v23 = vadd.f32 %v2015_v45, %v897_v17  ;;  %v912_v50 = vadd.f32 %v2015_v45, %v898_v10  ;;  %v913_v11 = vadd.f32 %v2015_v45, %v899_v62 }
  0x7a   : > { %v914_v30 = vadd.f32 %v2015_v45, %v900_v9  ;;  %v915_v34 = vmax.f32 %v907_v36, 0.0  ;;  %v916_v28 = vmax.f32 %v908_v3, 0.0  ;;  %v917_v14 = vmax.f32 %v909_v31, 0.0 }
  0x7b   : > { %v918_v43 = vmax.f32 %v910_v4, 0.0  ;;  %v919_v40 = vmax.f32 %v911_v23, 0.0  ;;  %v920_v25 = vmax.f32 %v912_v50, 0.0  ;;  %v921_v39 = vmax.f32 %v913_v11, 0.0 }
  0x7c   : > { %v922_v42 = vmax.f32 %v914_v30, 0.0  ;;  %949 = vst.msk [vmem:[#allocation3 + $0x11] sm:$0xff] %vm377_vm0, %v915_v34  ;;  %v999_v59 = vmul.f32 %v4017_v63, %v960_v1  ;;  %950 = vst.msk [vmem:[#allocation3 + $0x21] sm:$0xff] %vm377_vm0, %v916_v28  ;;  %v1007_v6 = vmul.f32 %v4018_v53, %v978_v38  ;;  %v1019_v2 = vmul.f32 %v4019_v16, %v960_v1 }
  0x7d   : > { %951 = vst.msk [vmem:[#allocation3 + $0x31] sm:$0xff] %vm377_vm0, %v917_v14  ;;  %952 = vst.msk [vmem:[#allocation3 + $0x41] sm:$0xff] %vm377_vm0, %v918_v43  ;;  %v1042_v0 = vrot.slane %v4021_v37, %v4020_v52  ;;  %v4023_v15 = vsub.s32 4, %v4022_v8  ;;  %v4024_v49 = vsub.s32 5, %v4022_v8  ;;  %v4025_v7 = vsub.s32 6, %v4022_v8 }
  0x7e   : > { %953 = vst.msk [vmem:[#allocation3 + $0x51] sm:$0xff] %vm377_vm0, %v919_v40  ;;  %954 = vst.msk [vmem:[#allocation3 + $0x61] sm:$0xff] %vm377_vm0, %v920_v25  ;;  %v1011_v24 = vadd.f32 %v1007_v6, %v999_v59  ;;  %v1027_v58 = vrot.slane %v1019_v2, 1  ;;  %v4026_v46 = vsub.s32 7, %v4022_v8 }
  0x7f   : > { %955 = vst.msk [vmem:[#allocation3 + $0x71] sm:$0xff] %vm377_vm0, %v921_v39  ;;  %956 = vst.msk [vmem:[#allocation3 + $0x81] sm:$0xff] %vm377_vm0, %v922_v42  ;;  %v1050_v60 = vrot.slane %v4021_v37, %v4023_v15  ;;  %v1062_v12 = vrot.slane %v4021_v37, %v4024_v49  ;;  %v1090_v5 = vrot.slane %v4021_v37, %v4025_v7 }
  0x80   : > { %v2932_v19 = vadd.f32 %v1027_v58, %v1011_v24  ;;  %v1098_v61 = vrot.slane %v4021_v37, %v4026_v46 }
  0x83   : > { %v962_v32 = vld [vmem:[#allocation3 + $0x10] ss:$2 sm:$0x1f]  ;;  %v980_v22 = vld [vmem:[#allocation3 + $0x11] ss:$2 sm:$0xf] }
  0x84   : > { %v2930_v54 = vld [vmem:[#allocation3 + $0x20] ss:$2 sm:$0x1f]  ;;  %v966_v13 = vld [vmem:[#allocation3 + $0x30] ss:$2 sm:$0x1f]  ;;  %v1043_v51 = vmul.f32 %v1042_v0, %v962_v32  ;;  %v1051_v29 = vmul.f32 %v1050_v60, %v980_v22  ;;  %v1063_v44 = vmul.f32 %v1062_v12, %v962_v32 }
  0x85   : > { %v2937_v33 = vld [vmem:[#allocation3 + $0x40] ss:$2 sm:$0x1f]  ;;  %v970_v48 = vld [vmem:[#allocation3 + $0x50] ss:$2 sm:$0x1f]  ;;  %v1000_v18 = vmul.f32 %v4017_v63, %v2930_v54  ;;  %v1020_v45 = vmul.f32 %v4019_v16, %v2930_v54  ;;  %v1044_v26 = vmul.f32 %v1042_v0, %v966_v13  ;;  %v1064_v21 = vmul.f32 %v1062_v12, %v966_v13 }
  0x86   : > { %v972_v35 = vld [vmem:[#allocation3 + $0x60] ss:$2 sm:$0x1f]  ;;  %v974_v56 = vld [vmem:[#allocation3 + $0x70] ss:$2 sm:$0x1f]  ;;  %v1001_v57 = vmul.f32 %v4017_v63, %v2937_v33  ;;  %v1021_v55 = vmul.f32 %v4019_v16, %v2937_v33  ;;  %v1045_v47 = vmul.f32 %v1042_v0, %v970_v48  ;;  %v1055_v62 = vadd.f32 %v1051_v29, %v1043_v51 }
  0x87   : > { %v976_v20 = vld [vmem:[#allocation3 + $0x80] ss:$2 sm:$0x1f]  ;;  %v982_v41 = vld [vmem:[#allocation3 + $0x21] ss:$2 sm:$0xf]  ;;  %v1002_v27 = vmul.f32 %v4017_v63, %v972_v35  ;;  %v1022_v17 = vmul.f32 %v4019_v16, %v972_v35  ;;  %v1046_v10 = vmul.f32 %v1042_v0, %v974_v56  ;;  %v1065_v31 = vmul.f32 %v1062_v12, %v970_v48 }
  0x88   : > { %v984_v9 = vld [vmem:[#allocation3 + $0x31] ss:$2 sm:$0xf]  ;;  %v986_v36 = vld [vmem:[#allocation3 + $0x41] ss:$2 sm:$0xf]  ;;  %v1008_v3 = vmul.f32 %v4018_v53, %v982_v41  ;;  %v1066_v4 = vmul.f32 %v1062_v12, %v974_v56  ;;  %v1091_v23 = vmul.f32 %v1090_v5, %v2930_v54  ;;  %v1092_v34 = vmul.f32 %v1090_v5, %v2937_v33 }
  0x89   : > { %v988_v1 = vld [vmem:[#allocation3 + $0x51] ss:$2 sm:$0xf]  ;;  %v990_v50 = vld [vmem:[#allocation3 + $0x61] ss:$2 sm:$0xf]  ;;  %v1009_v11 = vmul.f32 %v4018_v53, %v986_v36  ;;  %v1052_v30 = vmul.f32 %v1050_v60, %v984_v9  ;;  %v1093_v38 = vmul.f32 %v1090_v5, %v972_v35  ;;  %v1094_v25 = vmul.f32 %v1090_v5, %v976_v20 }
  0x8a   : > { %v992_v28 = vld [vmem:[#allocation3 + $0x71] ss:$2 sm:$0xf]  ;;  %v1010_v14 = vmul.f32 %v4018_v53, %v990_v50  ;;  %v1012_v43 = vadd.f32 %v1008_v3, %v1000_v18  ;;  %v1053_v40 = vmul.f32 %v1050_v60, %v988_v1  ;;  %v1028_v42 = vrot.slane %v1020_v45, 1  ;;  %v2016_v22 = vld [vmem:[%s3814_s3 + $0x8] ss:$0 sm:$0xff] }
  0x8b   : > { %v1013_v39 = vadd.f32 %v1009_v11, %v1001_v57  ;;  %v1029_v63 = vrot.slane %v1021_v55, 1  ;;  %v1099_v59 = vmul.f32 %v1098_v61, %v982_v41  ;;  %v1030_v6 = vrot.slane %v1022_v17, 1  ;;  %v994_v58 = vld [vmem:[#allocation3 + $0x81] ss:$2 sm:$0xf] }
  0x8c   : > { %v1054_v16 = vmul.f32 %v1050_v60, %v992_v28  ;;  %v1056_v2 = vadd.f32 %v1052_v30, %v1044_v26  ;;  %v1057_v24 = vadd.f32 %v1053_v40, %v1045_v47  ;;  %v1014_v37 = vadd.f32 %v1010_v14, %v1002_v27  ;;  %v2017_v3 = vld [vmem:[%s3815_s4] ss:$0 sm:$0xff] }
  0x8d   : > { %v1036_v0 = vadd.f32 %v1028_v42, %v1012_v43  ;;  %v1071_v8 = vrot.slane %v1063_v44, 1  ;;  %v1072_v15 = vrot.slane %v1064_v21, 1  ;;  %v1037_v49 = vadd.f32 %v1029_v63, %v1013_v39 }
  0x8e   : > { %v1058_v12 = vadd.f32 %v1054_v16, %v1046_v10  ;;  %v1073_v32 = vrot.slane %v1065_v31, 1  ;;  %v1074_v53 = vrot.slane %v1066_v4, 1  ;;  %v1100_v13 = vmul.f32 %v1098_v61, %v986_v36 }
  0x8f   : > { %v1079_v7 = vadd.f32 %v1071_v8, %v1055_v62  ;;  %v1080_v5 = vadd.f32 %v1072_v15, %v1056_v2  ;;  %v1101_v51 = vmul.f32 %v1098_v61, %v990_v50  ;;  %v1102_v46 = vmul.f32 %v1098_v61, %v994_v58 }
  0x90   : > { %v1081_v60 = vadd.f32 %v1073_v32, %v1057_v24  ;;  %v1082_v29 = vadd.f32 %v1074_v53, %v1058_v12  ;;  %v1103_v48 = vadd.f32 %v1099_v59, %v1091_v23  ;;  %v1038_v18 = vadd.f32 %v1030_v6, %v1014_v37 }
  0x91   : > { %v1104_v45 = vadd.f32 %v1100_v13, %v1092_v34  ;;  %v1105_v26 = vadd.f32 %v1101_v51, %v1093_v38  ;;  %v1106_v44 = vadd.f32 %v1102_v46, %v1094_v25  ;;  %v1111_v56 = vmul.f32 %v2016_v22, %v2930_v54  ;;  %v4033_v46 = vld [vmem:[#allocation21_spill] sm:$0xff] }
  0x92   : > { %v1112_v57 = vmul.f32 %v2016_v22, %v2937_v33  ;;  %v1113_v55 = vmul.f32 %v2016_v22, %v972_v35  ;;  %v1114_v47 = vmul.f32 %v2016_v22, %v976_v20  ;;  %v1083_v21 = vadd.f32 %v1079_v7, %v2932_v19 }
  0x93   : > { %v1084_v41 = vadd.f32 %v1080_v5, %v1036_v0  ;;  %v1085_v27 = vadd.f32 %v1081_v60, %v1037_v49  ;;  %v1119_v17 = vrot.slane %v1111_v56, 1  ;;  %v1086_v10 = vadd.f32 %v1082_v29, %v1038_v18 }
  0x94   : > { %v1120_v62 = vrot.slane %v1112_v57, 1  ;;  %v1121_v9 = vrot.slane %v1113_v55, 1  ;;  %v1122_v61 = vrot.slane %v1114_v47, 1 }
  0x95   : > { %v1127_v36 = vadd.f32 %v1119_v17, %v1103_v48 }
  0x96   : > { %v1128_v31 = vadd.f32 %v1120_v62, %v1104_v45  ;;  %v1129_v54 = vadd.f32 %v1121_v9, %v1105_v26  ;;  %v1130_v4 = vadd.f32 %v1122_v61, %v1106_v44  ;;  %v4034_v61 = vld [vmem:[#allocation26_spill] sm:$0xff] }
  0x97   : > { %v1131_v33 = vadd.f32 %v1127_v36, %v1083_v21 }
  0x98   : > { %v1132_v35 = vadd.f32 %v1128_v31, %v1084_v41  ;;  %v1133_v20 = vadd.f32 %v1129_v54, %v1085_v27  ;;  %v1134_v23 = vadd.f32 %v1130_v4, %v1086_v10 }
  0x99   : > { %v2963_v19 = vadd.f32 %v2017_v3, %v1131_v33 }
  0x9a   : > { %v2965_v1 = vadd.f32 %v2017_v3, %v1132_v35  ;;  %v2967_v50 = vadd.f32 %v2017_v3, %v1133_v20  ;;  %v2972_v38 = vadd.f32 %v2017_v3, %v1134_v23 }
  0x9b   : > { %v1145_v11 = vmul.f32 0.8, %v2963_v19  ;;  %v1148_v30 = vmul.f32 0.6, %v2963_v19  ;;  %v1151_v34 = vmul.f32 0.39999998, %v2963_v19  ;;  %v1180_v48 = vrot.slane %v2963_v19, %v4033_v46 }
  0x9c   : > { %4027 = vst [vmem:[#allocation62_spill] sm:$0xff] %v2967_v50  ;;  %v1146_v28 = vmul.f32 0.2, %v2965_v1  ;;  %v1149_v14 = vmul.f32 0.4, %v2965_v1  ;;  %v1200_v45 = vrot.slane %v2965_v1, %v4033_v46  ;;  %v1220_v26 = vrot.slane %v2967_v50, %v4033_v46 }
  0x9d   : > { %v1152_v43 = vmul.f32 0.6, %v2965_v1  ;;  %v1154_v40 = vmul.f32 0.19999999, %v2963_v19  ;;  %v1155_v25 = vmul.f32 0.8, %v2965_v1  ;;  %v1240_v9 = vrot.slane %v2972_v38, %v4033_v46 }
  0x9e   : > { %v1157_v39 = vmul.f32 0.2, %v2967_v50  ;;  %v2980_v42 = vadd.f32 %v1146_v28, %v1145_v11  ;;  %v2982_v63 = vadd.f32 %v1149_v14, %v1148_v30  ;;  %v1159_v6 = vmul.f32 0.4, %v2967_v50 }
  0x9f   : > { %v2984_v59 = vadd.f32 %v1152_v43, %v1151_v34  ;;  %v2987_v16 = vadd.f32 %v1155_v25, %v1154_v40  ;;  %v1161_v24 = vmul.f32 0.39999998, %v2965_v1  ;;  %v1162_v58 = vmul.f32 0.6, %v2967_v50 }
  0xa0   : > { %v2989_v2 = vadd.f32 %v1157_v39, %v1155_v25  ;;  %v2993_v37 = vadd.f32 %v1159_v6, %v1152_v43  ;;  %v1164_v0 = vmul.f32 0.19999999, %v2965_v1  ;;  %v1165_v8 = vmul.f32 0.8, %v2967_v50  ;;  %v4035_v25 = vld [vmem:[#allocation17_spill] sm:$0xff] }
  0xa1   : > { %v1167_v15 = vmul.f32 0.2, %v2972_v38  ;;  %v2998_v49 = vadd.f32 %v1162_v58, %v1161_v24  ;;  %v1169_v12 = vmul.f32 0.4, %v2972_v38  ;;  %v1171_v32 = vmul.f32 0.39999998, %v2967_v50 }
  0xa2   : > { %v1172_v53 = vmul.f32 0.6, %v2972_v38  ;;  %v3003_v22 = vadd.f32 %v1165_v8, %v1164_v0  ;;  %v1174_v5 = vmul.f32 0.19999999, %v2967_v50  ;;  %v1175_v13 = vmul.f32 0.8, %v2972_v38 }
  0xa3   : > { %v3005_v7 = vadd.f32 %v1167_v15, %v1165_v8  ;;  %v3009_v51 = vadd.f32 %v1169_v12, %v1162_v58  ;;  %v1184_v18 = vrot.slane %v2980_v42, %v4033_v46  ;;  %v1188_v44 = vrot.slane %v2982_v63, %v4033_v46 }
  0xa4   : > { %4028 = vst [vmem:[#allocation65_spill] sm:$0xff] %v3003_v22  ;;  %v3011_v60 = vadd.f32 %v1172_v53, %v1171_v32  ;;  %v3013_v29 = vadd.f32 %v1175_v13, %v1174_v5  ;;  %v1192_v56 = vrot.slane %v2984_v59, %v4033_v46  ;;  %v1196_v57 = vrot.slane %v2987_v16, %v4033_v46 }
  0xa5   : > { %4029 = vst [vmem:[#allocation47_spill] sm:$0xff] %v3005_v7  ;;  %4030 = vst [vmem:[#allocation42_spill] sm:$0xff] %v3009_v51  ;;  %v1204_v55 = vrot.slane %v2989_v2, %v4033_v46  ;;  %v1208_v47 = vrot.slane %v2993_v37, %v4033_v46  ;;  %v1212_v21 = vrot.slane %v2998_v49, %v4033_v46 }
  0xa6   : > { %4031 = vst [vmem:[#allocation49_spill] sm:$0xff] %v3011_v60  ;;  %4032 = vst [vmem:[#allocation51_spill] sm:$0xff] %v3013_v29  ;;  %v1216_v41 = vrot.slane %v3003_v22, %v4033_v46  ;;  %v1224_v27 = vrot.slane %v3005_v7, %v4033_v46  ;;  %v1228_v17 = vrot.slane %v3009_v51, %v4033_v46 }
  0xa7   : > { %v1232_v10 = vrot.slane %v3011_v60, %v4033_v46  ;;  %v1236_v62 = vrot.slane %v3013_v29, %v4033_v46  ;;  %v3049_v36 = vrot.slane %v2963_v19, %v4034_v61  ;;  %v3053_v3 = vrot.slane %v2980_v42, %v4034_v61 }
  0xa8   : > { %v3057_v31 = vrot.slane %v2982_v63, %v4034_v61  ;;  %v3061_v54 = vrot.slane %v2984_v59, %v4034_v61  ;;  %v3065_v4 = vrot.slane %v2987_v16, %v4034_v61  ;;  %v3069_v33 = vrot.slane %v2965_v1, %v4034_v61 }
  0xa9   : > { %v3073_v35 = vrot.slane %v2989_v2, %v4034_v61  ;;  %v3077_v20 = vrot.slane %v2993_v37, %v4034_v61  ;;  %v3081_v23 = vrot.slane %v2998_v49, %v4034_v61  ;;  %v3085_v11 = vrot.slane %v3003_v22, %v4034_v61 }
  0xaa   : > { %v3089_v30 = vrot.slane %v2967_v50, %v4034_v61  ;;  %v3093_v34 = vrot.slane %v3005_v7, %v4034_v61  ;;  %v3097_v28 = vrot.slane %v3009_v51, %v4034_v61  ;;  %v3101_v14 = vrot.slane %v3011_v60, %v4034_v61 }
  0xab   : > { %v3105_v43 = vrot.slane %v3013_v29, %v4034_v61  ;;  %v3109_v40 = vrot.slane %v2972_v38, %v4034_v61  ;;  %v3113_v39 = vrot.slane %v2963_v19, %v4035_v25  ;;  %v3117_v6 = vrot.slane %v2980_v42, %v4035_v25 }
  0xac   : > { %v3121_v24 = vrot.slane %v2982_v63, %v4035_v25  ;;  %v3125_v58 = vrot.slane %v2984_v59, %v4035_v25  ;;  %v3129_v0 = vrot.slane %v2987_v16, %v4035_v25  ;;  %v3133_v8 = vrot.slane %v2965_v1, %v4035_v25 }
  0xad   : > { %v3137_v15 = vrot.slane %v2989_v2, %v4035_v25  ;;  %v3141_v12 = vrot.slane %v2993_v37, %v4035_v25  ;;  %v3145_v32 = vrot.slane %v2998_v49, %v4035_v25  ;;  %v3149_v53 = vrot.slane %v3003_v22, %v4035_v25 }
  0xae   : > { %v3153_v5 = vrot.slane %v2967_v50, %v4035_v25  ;;  %v3157_v13 = vrot.slane %v3005_v7, %v4035_v25  ;;  %v3161_v46 = vrot.slane %v3009_v51, %v4035_v25  ;;  %v3165_v61 = vrot.slane %v3011_v60, %v4035_v25 }
  0xaf   : > { %v3169_v22 = vrot.slane %v3013_v29, %v4035_v25  ;;  %v3173_v50 = vrot.slane %v2972_v38, %v4035_v25  ;;  %v3177_v7 = vsel %vm1369_vm4, %v1180_v48, %v3049_v36  ;;  %v3181_v51 = vsel %vm1369_vm4, %v1184_v18, %v3053_v3 }
  0xb0   : > { %v3185_v60 = vsel %vm1369_vm4, %v1188_v44, %v3057_v31  ;;  %v3189_v29 = vsel %vm1369_vm4, %v1192_v56, %v3061_v54  ;;  %v3193_v25 = vsel %vm1369_vm4, %v1196_v57, %v3065_v4  ;;  %v3197_v48 = vsel %vm1369_vm4, %v1200_v45, %v3069_v33 }
  0xb1   : > { %4036 = vst [vmem:[#allocation53_spill] sm:$0xff] %v3193_v25  ;;  %4037 = vst [vmem:[#allocation55_spill] sm:$0xff] %v3197_v48  ;;  %v3201_v18 = vsel %vm1369_vm4, %v1204_v55, %v3073_v35  ;;  %v3205_v44 = vsel %vm1369_vm4, %v1208_v47, %v3077_v20  ;;  %v3209_v56 = vsel %vm1369_vm4, %v1212_v21, %v3081_v23 }
  0xb2   : > { %4038 = vst [vmem:[#allocation57_spill] sm:$0xff] %v3201_v18  ;;  %4039 = vst [vmem:[#allocation59_spill] sm:$0xff] %v3205_v44  ;;  %v3213_v57 = vsel %vm1369_vm4, %v1216_v41, %v3085_v11  ;;  %v3217_v45 = vsel %vm1369_vm4, %v1220_v26, %v3089_v30  ;;  %v3221_v55 = vsel %vm1369_vm4, %v1224_v27, %v3093_v34 }
  0xb3   : > { %4040 = vst [vmem:[#allocation61_spill] sm:$0xff] %v3209_v56  ;;  %4041 = vst [vmem:[#allocation43_spill] sm:$0xff] %v3213_v57  ;;  %v3225_v47 = vsel %vm1369_vm4, %v1228_v17, %v3097_v28  ;;  %v3229_v21 = vsel %vm1369_vm4, %v1232_v10, %v3101_v14  ;;  %v3233_v41 = vsel %vm1369_vm4, %v1236_v62, %v3105_v43 }
  0xb4   : > { %4042 = vst [vmem:[#allocation63_spill] sm:$0xff] %v3217_v45  ;;  %4043 = vst [vmem:[#allocation64_spill] sm:$0xff] %v3221_v55  ;;  %v3237_v26 = vsel %vm1369_vm4, %v1240_v9, %v3109_v40  ;;  %v3242_v27 = vsel %vm1386_vm5, %v3049_v36, %v3113_v39  ;;  %v3247_v17 = vsel %vm1386_vm5, %v3053_v3, %v3117_v6 }
  0xb5   : > { %4044 = vst [vmem:[#allocation66_spill] sm:$0xff] %v3225_v47  ;;  %4045 = vst [vmem:[#allocation67_spill] sm:$0xff] %v3229_v21  ;;  %v3252_v10 = vsel %vm1386_vm5, %v3057_v31, %v3121_v24  ;;  %v3257_v62 = vsel %vm1386_vm5, %v3061_v54, %v3125_v58  ;;  %v3262_v9 = vsel %vm1386_vm5, %v3065_v4, %v3129_v0 }
  0xb6   : > { %4046 = vst [vmem:[#allocation68_spill] sm:$0xff] %v3233_v41  ;;  %4047 = vst [vmem:[#allocation48_spill] sm:$0xff] %v3237_v26  ;;  %v3267_v26 = vsel %vm1386_vm5, %v3069_v33, %v3133_v8  ;;  %v3272_v41 = vsel %vm1386_vm5, %v3073_v35, %v3137_v15  ;;  %v3277_v21 = vsel %vm1386_vm5, %v3077_v20, %v3141_v12 }
  0xb7   : > { %4048 = vst [vmem:[#allocation50_spill] sm:$0xff] %v3262_v9  ;;  %4049 = vst [vmem:[#allocation52_spill] sm:$0xff] %v3267_v26  ;;  %v3282_v47 = vsel %vm1386_vm5, %v3081_v23, %v3145_v32  ;;  %v3287_v55 = vsel %vm1386_vm5, %v3085_v11, %v3149_v53  ;;  %v3292_v45 = vsel %vm1386_vm5, %v3089_v30, %v3153_v5 }
  0xb8   : > { %4050 = vst [vmem:[#allocation54_spill] sm:$0xff] %v3272_v41  ;;  %4051 = vst [vmem:[#allocation56_spill] sm:$0xff] %v3277_v21  ;;  %v3297_v57 = vsel %vm1386_vm5, %v3093_v34, %v3157_v13  ;;  %v3302_v56 = vsel %vm1386_vm5, %v3097_v28, %v3161_v46  ;;  %v1414_v21 = vrot.slane %v2982_v63, %v4020_v52  ;;  %v4060_v63 = vld [vmem:[#allocation65_spill] sm:$0xff] }
  0xb9   : > { %4052 = vst [vmem:[#allocation58_spill] sm:$0xff] %v3282_v47  ;;  %4053 = vst [vmem:[#allocation60_spill] sm:$0xff] %v3287_v55  ;;  %v3307_v47 = vsel %vm1386_vm5, %v3101_v14, %v3165_v61  ;;  %v3312_v55 = vsel %vm1386_vm5, %v3105_v43, %v3169_v22  ;;  %v1426_v44 = vrot.slane %v2965_v1, %v4020_v52  ;;  %v4063_v1 = vld [vmem:[#allocation42_spill] sm:$0xff] }
  0xba   : > { %4054 = vst [vmem:[#allocation44_spill] sm:$0xff] %v3292_v45  ;;  %4055 = vst [vmem:[#allocation45_spill] sm:$0xff] %v3297_v57  ;;  %v3317_v45 = vsel %vm1386_vm5, %v3109_v40, %v3173_v50  ;;  %v1406_v57 = vrot.slane %v2963_v19, %v4020_v52  ;;  %v1434_v19 = vrot.slane %v2993_v37, %v4020_v52  ;;  %v4065_v37 = vld [vmem:[#allocation51_spill] sm:$0xff] }
  0xbb   : > { %4056 = vst [vmem:[#allocation46_spill] sm:$0xff] %v3302_v56  ;;  %4057 = vst [vmem:[#allocation22_spill] sm:$0xff] %v3307_v47  ;;  %v1410_v56 = vrot.slane %v2980_v42, %v4020_v52  ;;  %v1418_v47 = vrot.slane %v2984_v59, %v4020_v52  ;;  %v1438_v42 = vrot.slane %v2998_v49, %v4020_v52  ;;  %v4061_v59 = vld [vmem:[#allocation62_spill] sm:$0xff] }
  0xbc   : > { %4058 = vst [vmem:[#allocation30_spill] sm:$0xff] %v3312_v55  ;;  %4059 = vst [vmem:[#allocation4_spill] sm:$0xff] %v3317_v45  ;;  %v1422_v55 = vrot.slane %v2987_v16, %v4020_v52  ;;  %v1430_v45 = vrot.slane %v2989_v2, %v4020_v52  ;;  %v1442_v41 = vrot.slane %v4060_v63, %v4020_v52  ;;  %v4062_v16 = vld [vmem:[#allocation47_spill] sm:$0xff]  ;;  %v4064_v2 = vld [vmem:[#allocation49_spill] sm:$0xff] }
  0xbd   : > { %v1446_v18 = vrot.slane %v4061_v59, %v4020_v52  ;;  %v1450_v26 = vrot.slane %v4062_v16, %v4020_v52  ;;  %v1454_v48 = vrot.slane %v4063_v1, %v4020_v52  ;;  %v1458_v9 = vrot.slane %v4064_v2, %v4020_v52 }
  0xbe   : > { %v1462_v25 = vrot.slane %v4065_v37, %v4020_v52  ;;  %v1466_v49 = vrot.slane %v2972_v38, %v4020_v52  ;;  %v1467_v63 = vsel %vm1369_vm4, %v3049_v36, %v3113_v39  ;;  %v1468_v59 = vsel %vm1369_vm4, %v3053_v3, %v3117_v6 }
  0xbf   : > { %v1469_v16 = vsel %vm1369_vm4, %v3057_v31, %v3121_v24  ;;  %v3363_v1 = vsel %vm1369_vm4, %v3061_v54, %v3125_v58  ;;  %v3368_v52 = vsel %vm1369_vm4, %v3065_v4, %v3129_v0  ;;  %v3373_v38 = vsel %vm1369_vm4, %v3069_v33, %v3133_v8 }
  0xc0   : > { %v3378_v36 = vsel %vm1369_vm4, %v3073_v35, %v3137_v15  ;;  %v3383_v3 = vsel %vm1369_vm4, %v3077_v20, %v3141_v12  ;;  %v3388_v31 = vsel %vm1369_vm4, %v3081_v23, %v3145_v32  ;;  %v3393_v54 = vsel %vm1369_vm4, %v3085_v11, %v3149_v53  ;;  %v3405_v35 = vpop.permute.xlu0 %1535 }
  0xc1   : > { %v3398_v4 = vsel %vm1369_vm4, %v3089_v30, %v3153_v5  ;;  %v3403_v33 = vsel %vm1369_vm4, %v3093_v34, %v3157_v13  ;;  %v3410_v20 = vsel %vm1369_vm4, %v3097_v28, %v3161_v46  ;;  %v3415_v23 = vsel %vm1369_vm4, %v3101_v14, %v3165_v61 }
  0xc2   : > { %v3420_v11 = vsel %vm1369_vm4, %v3105_v43, %v3169_v22  ;;  %v3425_v30 = vsel %vm1369_vm4, %v3109_v40, %v3173_v50  ;;  %v1483_v34 = vsel %vm1386_vm5, %v3113_v39, %v1406_v57  ;;  %v1484_v28 = vsel %vm1386_vm5, %v3117_v6, %v1410_v56  ;;  %v4067_v56 = vld [vmem:[#allocation50_spill] sm:$0xff] }
  0xc3   : > { %v1485_v14 = vsel %vm1386_vm5, %v3121_v24, %v1414_v21  ;;  %v1486_v2 = vsel %vm1386_vm5, %v3125_v58, %v1418_v47  ;;  %v1487_v43 = vsel %vm1386_vm5, %v3129_v0, %v1422_v55  ;;  %v3439_v37 = vsel %vm1386_vm5, %v3133_v8, %v1426_v44  ;;  %v4069_v47 = vld [vmem:[#allocation52_spill] sm:$0xff] }
  0xc4   : > { %v3443_v40 = vsel %vm1386_vm5, %v3137_v15, %v1430_v45  ;;  %v3447_v39 = vsel %vm1386_vm5, %v3141_v12, %v1434_v19  ;;  %v3451_v6 = vsel %vm1386_vm5, %v3145_v32, %v1438_v42  ;;  %v3455_v24 = vsel %vm1386_vm5, %v3149_v53, %v1442_v41  ;;  %v4068_v45 = vld [vmem:[#allocation55_spill] sm:$0xff]  ;;  %v4070_v41 = vld [vmem:[#allocation57_spill] sm:$0xff] }
  0xc5   : > { %v3459_v58 = vsel %vm1386_vm5, %v3153_v5, %v1446_v18  ;;  %v3463_v0 = vsel %vm1386_vm5, %v3157_v13, %v1450_v26  ;;  %v3467_v8 = vsel %vm1386_vm5, %v3161_v46, %v1454_v48  ;;  %v3471_v15 = vsel %vm1386_vm5, %v3165_v61, %v1458_v9  ;;  %v3485_v48 = vpop.permute.xlu0 %1540  ;;  %v4071_v9 = vld [vmem:[#allocation54_spill] sm:$0xff]  ;;  %v4072_v42 = vld [vmem:[#allocation59_spill] sm:$0xff] }
  0xc6   : > { %v3475_v12 = vsel %vm1386_vm5, %v3169_v22, %v1462_v25  ;;  %v3479_v32 = vsel %vm1386_vm5, %v3173_v50, %v1466_v49  ;;  %v1499_v53 = vsub.f32 %v1467_v63, %v3177_v7  ;;  %v1500_v5 = vsub.f32 %v1483_v34, %v3242_v27  ;;  %v4066_v25 = vld [vmem:[#allocation53_spill] sm:$0xff]  ;;  %v4073_v63 = vld [vmem:[#allocation56_spill] sm:$0xff] }
  0xc7   : > { %v1501_v13 = vsub.f32 %v1468_v59, %v3181_v51  ;;  %v1502_v46 = vsub.f32 %v1484_v28, %v3247_v17  ;;  %v1503_v61 = vsub.f32 %v1469_v16, %v3185_v60  ;;  %v1504_v18 = vsub.f32 %v1485_v14, %v3252_v10  ;;  %v4074_v16 = vld [vmem:[#allocation61_spill] sm:$0xff]  ;;  %v4075_v28 = vld [vmem:[#allocation58_spill] sm:$0xff]  ;;  %v4076_v14 = vld [vmem:[#allocation43_spill] sm:$0xff] }
  0xc8   : > { %v1505_v22 = vsub.f32 %v3363_v1, %v3189_v29  ;;  %v1506_v50 = vsub.f32 %v1486_v2, %v3257_v62  ;;  %v1507_v44 = vsub.f32 %v3368_v52, %v4066_v25  ;;  %v1508_v57 = vsub.f32 %v1487_v43, %v4067_v56  ;;  %v4077_v43 = vld [vmem:[#allocation60_spill] sm:$0xff] }
  0xc9   : > { %v1509_v55 = vsub.f32 %v3373_v38, %v4068_v45  ;;  %v1510_v21 = vsub.f32 %v3439_v37, %v4069_v47  ;;  %v1511_v26 = vsub.f32 %v3378_v36, %v4070_v41  ;;  %v1512_v19 = vsub.f32 %v3443_v40, %v4071_v9  ;;  %v4078_v40 = vld [vmem:[#allocation63_spill] sm:$0xff] }
  0xca   : > { %v1513_v49 = vsub.f32 %v3383_v3, %v4072_v42  ;;  %v1514_v59 = vsub.f32 %v3447_v39, %v4073_v63  ;;  %v1515_v1 = vsub.f32 %v3388_v31, %v4074_v16  ;;  %v1543_v52 = vmul.f32 %v3405_v35, %v1499_v53 }
  0xcb   : > { %v1544_v38 = vmul.f32 %v3485_v48, %v1500_v5  ;;  %v1545_v34 = vmul.f32 %v3405_v35, %v1501_v13  ;;  %v1516_v36 = vsub.f32 %v3451_v6, %v4075_v28  ;;  %v1517_v2 = vsub.f32 %v3393_v54, %v4076_v14  ;;  %v4082_v54 = vld [vmem:[#allocation66_spill] sm:$0xff] }
  0xcc   : > { %v1518_v3 = vsub.f32 %v3455_v24, %v4077_v43  ;;  %v1546_v37 = vmul.f32 %v3485_v48, %v1502_v46  ;;  %v1547_v16 = vmul.f32 %v3405_v35, %v1503_v61  ;;  %v1548_v43 = vmul.f32 %v3485_v48, %v1504_v18  ;;  %v4084_v61 = vld [vmem:[#allocation67_spill] sm:$0xff]  ;;  %v4085_v28 = vld [vmem:[#allocation22_spill] sm:$0xff]  ;;  %v4089_v24 = vld [vmem:[#allocation4_spill] sm:$0xff] }
  0xcd   : > { %v1549_v31 = vmul.f32 %v3405_v35, %v1505_v22  ;;  %v1575_v53 = vadd.f32 %v1543_v52, %v3177_v7  ;;  %v1576_v39 = vadd.f32 %v1544_v38, %v3242_v27  ;;  %v1577_v13 = vadd.f32 %v1545_v34, %v3181_v51  ;;  %v4087_v22 = vld [vmem:[#allocation30_spill] sm:$0xff]  ;;  %v4088_v52 = vld [vmem:[#allocation48_spill] sm:$0xff] }
  0xce   : > { %v1550_v14 = vmul.f32 %v3485_v48, %v1506_v50  ;;  %v1578_v46 = vadd.f32 %v1546_v37, %v3247_v17  ;;  %v1551_v27 = vmul.f32 %v3405_v35, %v1507_v44  ;;  %v1579_v51 = vadd.f32 %v1547_v16, %v3185_v60 }
  0xcf   : > { %v1552_v34 = vmul.f32 %v3485_v48, %v1508_v57  ;;  %v1553_v6 = vmul.f32 %v3405_v35, %v1509_v55  ;;  %v1580_v50 = vadd.f32 %v1548_v43, %v3252_v10  ;;  %v1581_v17 = vadd.f32 %v1549_v31, %v3189_v29 }
  0xd0   : > { %v2018_v37 = vmul.f32 -1.442695, %v1575_v53  ;;  %v2019_v18 = vmul.f32 -1.442695, %v1576_v39  ;;  %v2020_v5 = vmul.f32 -1.442695, %v1577_v13  ;;  %v1530_v7 = vsub.f32 %v3479_v32, %v4089_v24 }
  0xd1   : > { %v1554_v44 = vmul.f32 %v3485_v48, %v1510_v21  ;;  %v1582_v60 = vadd.f32 %v1550_v14, %v3257_v62  ;;  %v2021_v16 = vmul.f32 -1.442695, %v1578_v46  ;;  %v1555_v38 = vmul.f32 %v3405_v35, %v1511_v26 }
  0xd2   : > { %v1583_v57 = vadd.f32 %v1551_v27, %v4066_v25  ;;  %2081 = vpow2.f32 %v2018_v37  ;;  %v2022_v55 = vmul.f32 -1.442695, %v1579_v51  ;;  %v1556_v10 = vmul.f32 %v3485_v48, %v1512_v19  ;;  %v4094_v51 = vld [vmem:[#allocation58_spill] sm:$0xff] }
  0xd3   : > { %v1584_v29 = vadd.f32 %v1552_v34, %v4067_v56  ;;  %2083 = vpow2.f32 %v2019_v18  ;;  %v2023_v43 = vmul.f32 -1.442695, %v1580_v50  ;;  %v1557_v31 = vmul.f32 %v3405_v35, %v1513_v49  ;;  %v4095_v34 = vld [vmem:[#allocation64_spill] sm:$0xff] }
  0xd4   : > { %v1585_v39 = vadd.f32 %v1553_v6, %v4068_v45  ;;  %2085 = vpow2.f32 %v2020_v5  ;;  %v2024_v21 = vmul.f32 -1.442695, %v1581_v17  ;;  %v1558_v62 = vmul.f32 %v3485_v48, %v1514_v59  ;;  %v4097_v17 = vld [vmem:[#allocation43_spill] sm:$0xff] }
  0xd5   : > { %v1586_v26 = vadd.f32 %v1554_v44, %v4069_v47  ;;  %2087 = vpow2.f32 %v2021_v16  ;;  %v2025_v25 = vmul.f32 -1.442695, %v1582_v60  ;;  %v1559_v14 = vmul.f32 %v3405_v35, %v1515_v1 }
  0xd6   : > { %v1587_v19 = vadd.f32 %v1555_v38, %v4070_v41  ;;  %2089 = vpow2.f32 %v2022_v55  ;;  %v2026_v56 = vmul.f32 -1.442695, %v1583_v57  ;;  %v1560_v53 = vmul.f32 %v3485_v48, %v1516_v36  ;;  %v4100_v55 = vld [vmem:[#allocation60_spill] sm:$0xff] }
  0xd7   : > { %v1588_v49 = vadd.f32 %v1556_v10, %v4071_v9  ;;  %2091 = vpow2.f32 %v2023_v43  ;;  %v2027_v45 = vmul.f32 -1.442695, %v1584_v29  ;;  %v1561_v5 = vmul.f32 %v3405_v35, %v1517_v2  ;;  %v4091_v9 = vld [vmem:[#allocation61_spill] sm:$0xff]  ;;  %v4092_v2 = vld [vmem:[#allocation44_spill] sm:$0xff] }
  0xd8   : > { %v1589_v59 = vadd.f32 %v1557_v31, %v4072_v42  ;;  %2093 = vpow2.f32 %v2024_v21  ;;  %v2028_v47 = vmul.f32 -1.442695, %v1585_v39  ;;  %v1562_v13 = vmul.f32 %v3485_v48, %v1518_v3 }
  0xd9   : > { %v1590_v1 = vadd.f32 %v1558_v62, %v4073_v63  ;;  %2095 = vpow2.f32 %v2025_v25  ;;  %v2029_v41 = vmul.f32 -1.442695, %v1586_v26  ;;  %v4090_v6 = vsub.f32 %v3398_v4, %v4078_v40 }
  0xda   : > { %v1591_v46 = vadd.f32 %v1559_v14, %v4091_v9  ;;  %2097 = vpow2.f32 %v2026_v56  ;;  %v2030_v18 = vmul.f32 -1.442695, %v1587_v19  ;;  %v4093_v42 = vsub.f32 %v3459_v58, %v4092_v2  ;;  %v4098_v58 = vld [vmem:[#allocation45_spill] sm:$0xff] }
  0xdb   : > { %v1563_v36 = vmul.f32 %v3405_v35, %v4090_v6  ;;  %v1592_v3 = vadd.f32 %v1560_v53, %v4094_v51  ;;  %2099 = vpow2.f32 %v2027_v45  ;;  %v2031_v63 = vmul.f32 -1.442695, %v1588_v49 }
  0xdc   : > { %v1564_v27 = vmul.f32 %v3485_v48, %v4093_v42  ;;  %v3585_v38 = vpop.eup %2081  ;;  %v4096_v4 = vsub.f32 %v3403_v33, %v4095_v34  ;;  %v1593_v37 = vadd.f32 %v1561_v5, %v4097_v17  ;;  %2101 = vpow2.f32 %v2028_v47 }
  0xdd   : > { %v2032_v44 = vmul.f32 -1.442695, %v1589_v59  ;;  %v3592_v60 = vpop.eup %2083  ;;  %v4099_v16 = vsub.f32 %v3463_v0, %v4098_v58  ;;  %v1594_v10 = vadd.f32 %v1562_v13, %v4100_v55  ;;  %2103 = vpow2.f32 %v2029_v41  ;;  %v4102_v0 = vld [vmem:[#allocation46_spill] sm:$0xff] }
  0xde   : > { %v1565_v50 = vmul.f32 %v3405_v35, %v4096_v4  ;;  %v2033_v29 = vmul.f32 -1.442695, %v1590_v1  ;;  %v3599_v43 = vpop.eup %2085  ;;  %v4101_v33 = vsub.f32 %v3410_v20, %v4082_v54  ;;  %v1595_v39 = vadd.f32 %v1563_v36, %v4078_v40 }
  0xdf   : > { %v1566_v57 = vmul.f32 %v3485_v48, %v4099_v16  ;;  %2105 = vpow2.f32 %v2030_v18  ;;  %v2034_v21 = vmul.f32 -1.442695, %v1591_v46  ;;  %v3606_v62 = vpop.eup %2087  ;;  %v4103_v26 = vsub.f32 %v3467_v8, %v4102_v0 }
  0xe0   : > { %v1567_v31 = vmul.f32 %v3405_v35, %v4101_v33  ;;  %v1596_v14 = vadd.f32 %v1564_v27, %v4092_v2  ;;  %2107 = vpow2.f32 %v2031_v63  ;;  %v2035_v19 = vmul.f32 -1.442695, %v1592_v3  ;;  %v3613_v56 = vpop.eup %2089 }
  0xe1   : > { %v1568_v25 = vmul.f32 %v3485_v48, %v4103_v26  ;;  %v4104_v20 = vsub.f32 %v3415_v23, %v4084_v61  ;;  %v1597_v53 = vadd.f32 %v1565_v50, %v4095_v34  ;;  %2109 = vpow2.f32 %v2032_v44  ;;  %v3620_v45 = vpop.eup %2091  ;;  %v4106_v23 = vld [vmem:[#allocation68_spill] sm:$0xff] }
  0xe2   : > { %v2036_v49 = vmul.f32 -1.442695, %v1593_v37  ;;  %v4105_v8 = vsub.f32 %v3471_v15, %v4085_v28  ;;  %v1598_v59 = vadd.f32 %v1566_v57, %v4098_v58  ;;  %2111 = vpow2.f32 %v2033_v29  ;;  %v3627_v13 = vpop.eup %2093 }
  0xe3   : > { %v1569_v40 = vmul.f32 %v3405_v35, %v4104_v20  ;;  %v2037_v47 = vmul.f32 -1.442695, %v1594_v10  ;;  %v4107_v1 = vsub.f32 %v3420_v11, %v4106_v23  ;;  %v1599_v6 = vadd.f32 %v1567_v31, %v4082_v54  ;;  %v3634_v9 = vpop.eup %2095 }
  0xe4   : > { %v1570_v5 = vmul.f32 %v3485_v48, %v4105_v8  ;;  %2113 = vpow2.f32 %v2034_v21  ;;  %v2038_v36 = vmul.f32 -1.442695, %v1595_v39  ;;  %v4108_v15 = vsub.f32 %v3475_v12, %v4087_v22  ;;  %v2098_v42 = vpop.eup %2097 }
  0xe5   : > { %v1571_v41 = vmul.f32 %v3405_v35, %v4107_v1  ;;  %v1600_v18 = vadd.f32 %v1568_v25, %v4102_v0  ;;  %2115 = vpow2.f32 %v2035_v19  ;;  %v2039_v2 = vmul.f32 -1.442695, %v1596_v14  ;;  %v2100_v3 = vpop.eup %2099 }
  0xe6   : > { %v1572_v46 = vmul.f32 %v3485_v48, %v4108_v15  ;;  %v4109_v11 = vsub.f32 %v3425_v30, %v4088_v52  ;;  %v1601_v54 = vadd.f32 %v1569_v40, %v4084_v61  ;;  %2117 = vpow2.f32 %v2036_v49  ;;  %v2102_v4 = vpop.eup %2101 }
  0xe7   : > { %v2040_v51 = vmul.f32 -1.442695, %v1597_v53  ;;  %v1574_v12 = vmul.f32 %v3485_v48, %v1530_v7  ;;  %v1602_v63 = vadd.f32 %v1570_v5, %v4085_v28  ;;  %2119 = vpow2.f32 %v2037_v47 }
  0xe8   : > { %v1573_v27 = vmul.f32 %v3405_v35, %v4109_v11  ;;  %v2041_v34 = vmul.f32 -1.442695, %v1598_v59  ;;  %v1603_v50 = vadd.f32 %v1571_v41, %v4106_v23  ;;  %2121 = vpow2.f32 %v2038_v36  ;;  %v2104_v35 = vpop.eup %2103  ;;  %v4111_v11 = vld [vmem:[#allocation6_spill] sm:$0xff] }
  0xe9   : > { %v2042_v30 = vmul.f32 -1.442695, %v1599_v6  ;;  %v1604_v61 = vadd.f32 %v1572_v46, %v4087_v22  ;;  %2123 = vpow2.f32 %v2039_v2  ;;  %v2043_v17 = vmul.f32 -1.442695, %v1600_v18  ;;  %v2106_v37 = vpop.eup %2105  ;;  %v4110_v46 = vld [vmem:[#allocation5_spill] sm:$0xff] }
  0xea   : > { %v1605_v44 = vadd.f32 %v1573_v27, %v4088_v52  ;;  %2125 = vpow2.f32 %v2040_v51  ;;  %v2044_v32 = vmul.f32 -1.442695, %v1601_v54  ;;  %v2108_v48 = vpop.eup %2107  ;;  %v1606_v28 = vadd.f32 %v1574_v12, %v4089_v24 }
  0xeb   : > { %2127 = vpow2.f32 %v2041_v34  ;;  %v2045_v7 = vmul.f32 -1.442695, %v1602_v63  ;;  %v2110_v58 = vpop.eup %2109  ;;  %v2046_v16 = vmul.f32 -1.442695, %v1603_v50  ;;  %v2047_v55 = vmul.f32 -1.442695, %v1604_v61 }
  0xec   : > { %2129 = vpow2.f32 %v2042_v30  ;;  %v2112_v57 = vpop.eup %2111  ;;  %v2048_v22 = vmul.f32 -1.442695, %v1605_v44  ;;  %v2049_v33 = vmul.f32 -1.442695, %v1606_v28  ;;  %v1703_v31 = vadd.f32 1.0, %v3585_v38  ;;  %v4114_v61 = vld [vmem:[#allocation9_spill] sm:$0xff] }
  0xed   : > { %2131 = vpow2.f32 %v2043_v17  ;;  %v1704_v24 = vadd.f32 1.0, %v3592_v60  ;;  %v1705_v0 = vadd.f32 1.0, %v3599_v43  ;;  %v1706_v25 = vadd.f32 1.0, %v3606_v62 }
  0xee   : > { %v2114_v10 = vpop.eup %2113  ;;  %2133 = vpow2.f32 %v2044_v32  ;;  %v1707_v19 = vadd.f32 1.0, %v3613_v56  ;;  %v1708_v20 = vadd.f32 1.0, %v3620_v45  ;;  %v1709_v40 = vadd.f32 1.0, %v3627_v13  ;;  %v4115_v32 = vld [vmem:[#allocation10_spill] sm:$0xff] }
  0xef   : > { %v2116_v29 = vpop.eup %2115  ;;  %2135 = vpow2.f32 %v2045_v7  ;;  %v1710_v53 = vadd.f32 1.0, %v3634_v9  ;;  %v1711_v49 = vadd.f32 1.0, %v2098_v42  ;;  %v1712_v8 = vadd.f32 1.0, %v2100_v3  ;;  %v4112_v3 = vld [vmem:[#allocation7_spill] sm:$0xff] }
  0xf0   : > { %v2118_v52 = vpop.eup %2117  ;;  %2137 = vpow2.f32 %v2046_v16  ;;  %v1713_v5 = vadd.f32 1.0, %v2102_v4  ;;  %v1714_v47 = vadd.f32 1.0, %v2104_v35  ;;  %v1715_v23 = vadd.f32 1.0, %v2106_v37  ;;  %v4113_v4 = vld [vmem:[#allocation8_spill] sm:$0xff] }
  0xf1   : > { %v2120_v39 = vpop.eup %2119  ;;  %2139 = vpow2.f32 %v2047_v55  ;;  %v1716_v41 = vadd.f32 1.0, %v2108_v48  ;;  %v1717_v36 = vadd.f32 1.0, %v2110_v58  ;;  %v1718_v15 = vadd.f32 1.0, %v2112_v57  ;;  %v4116_v58 = vld [vmem:[#allocation11_spill] sm:$0xff] }
  0xf2   : > { %v3657_v21 = vpop.eup %2121  ;;  %2141 = vpow2.f32 %v2048_v22  ;;  %v1719_v42 = vadd.f32 1.0, %v2114_v10  ;;  %v1720_v51 = vadd.f32 1.0, %v2116_v29  ;;  %v1721_v34 = vadd.f32 1.0, %v2118_v52  ;;  %v4117_v10 = vld [vmem:[#allocation12_spill] sm:$0xff]  ;;  %v4118_v52 = vld [vmem:[#allocation13_spill] sm:$0xff] }
  0xf3   : > { %v3660_v26 = vpop.eup %2123  ;;  %2143 = vpow2.f32 %v2049_v33  ;;  %v1722_v35 = vadd.f32 1.0, %v2120_v39  ;;  %v1723_v44 = vadd.f32 1.0, %v3657_v21  ;;  %v4119_v21 = vld [vmem:[#allocation14_spill] sm:$0xff] }
  0xf4   : > { %v3663_v14 = vpop.eup %2125  ;;  %2145 = vrcp.f32 %v1703_v31  ;;  %v1724_v7 = vadd.f32 1.0, %v3660_v26 }
  0xf5   : > { %v3666_v38 = vpop.eup %2127  ;;  %2147 = vrcp.f32 %v1704_v24  ;;  %v1725_v55 = vadd.f32 1.0, %v3663_v14  ;;  %v4120_v14 = vld [vmem:[#allocation15_spill] sm:$0xff] }
  0xf6   : > { %v3669_v60 = vpop.eup %2129  ;;  %2149 = vrcp.f32 %v1705_v0  ;;  %v1726_v33 = vadd.f32 1.0, %v3666_v38 }
  0xf7   : > { %v3672_v43 = vpop.eup %2131  ;;  %2151 = vrcp.f32 %v1706_v25  ;;  %v1727_v24 = vadd.f32 1.0, %v3669_v60  ;;  %v4121_v60 = vld [vmem:[#allocation16_spill] sm:$0xff] }
  0xf8   : > { %v3675_v62 = vpop.eup %2133  ;;  %2153 = vrcp.f32 %v1707_v19  ;;  %v1728_v25 = vadd.f32 1.0, %v3672_v43  ;;  %v4122_v43 = vld [vmem:[#allocation18_spill] sm:$0xff] }
  0xf9   : > { %v3677_v56 = vpop.eup %2135  ;;  %2155 = vrcp.f32 %v1708_v20  ;;  %v1729_v20 = vadd.f32 1.0, %v3675_v62  ;;  %v4123_v62 = vld [vmem:[#allocation19_spill] sm:$0xff] }
  0xfa   : > { %v3679_v45 = vpop.eup %2137  ;;  %2157 = vrcp.f32 %v1709_v40 }
  0xfb   : > { %v3681_v59 = vpop.eup %2139  ;;  %2159 = vrcp.f32 %v1710_v53 }
  0xfc   : > { %v3683_v13 = vpop.eup %2141  ;;  %2161 = vrcp.f32 %v1711_v49  ;;  %v1730_v49 = vadd.f32 1.0, %v3677_v56  ;;  %v4124_v56 = vld [vmem:[#allocation20_spill] sm:$0xff] }
  0xfd   : > { %v3685_v1 = vpop.eup %2143  ;;  %2163 = vrcp.f32 %v1712_v8 }
  0xfe   : > { %v2146_v6 = vpop.eup %2145  ;;  %2165 = vrcp.f32 %v1713_v5 }
  0xff   : > { %v2148_v9 = vpop.eup %2147  ;;  %2167 = vrcp.f32 %v1714_v47  ;;  %v1799_v18 = vmul.f32 %v2146_v6, %v4110_v46  ;;  %v1731_v47 = vadd.f32 1.0, %v3679_v45  ;;  %v1732_v6 = vadd.f32 1.0, %v3681_v59  ;;  %v4125_v45 = vld [vmem:[#allocation23_spill] sm:$0xff]  ;;  %v4126_v59 = vld [vmem:[#allocation24_spill] sm:$0xff] }
 0x100   : > { %v2150_v2 = vpop.eup %2149  ;;  %2169 = vrcp.f32 %v1715_v23  ;;  %v1800_v27 = vmul.f32 %v2148_v9, %v4111_v11 }
 0x101   : > { %v2152_v54 = vpop.eup %2151  ;;  %2171 = vrcp.f32 %v1716_v41  ;;  %v1801_v12 = vmul.f32 %v2150_v2, %v4112_v3  ;;  %1831 = vst.msk [vmem:[%s3692_s27] sm:$0xff] %vm377_vm0, %v1799_v18  ;;  %v1734_v2 = vadd.f32 1.0, %v3685_v1 }
 0x102   : > { %v2154_v63 = vpop.eup %2153  ;;  %2173 = vrcp.f32 %v1717_v36  ;;  %v1802_v50 = vmul.f32 %v2152_v54, %v4113_v4  ;;  %1832 = vst.msk [vmem:[%s3692_s27 + $0x8] sm:$0xff] %vm377_vm0, %v1800_v27  ;;  %v4127_v27 = vld [vmem:[#allocation25_spill] sm:$0xff] }
 0x103   : > { %v2156_v30 = vpop.eup %2155  ;;  %2175 = vrcp.f32 %v1718_v15  ;;  %v1803_v17 = vmul.f32 %v2154_v63, %v4114_v61  ;;  %1833 = vst.msk [vmem:[%s3692_s27 + $0x10] sm:$0xff] %vm377_vm0, %v1801_v12  ;;  %v1733_v15 = vadd.f32 1.0, %v3683_v13  ;;  %v4129_v12 = vld [vmem:[#allocation28_spill] sm:$0xff]  ;;  %v4130_v4 = vld [vmem:[#allocation29_spill] sm:$0xff] }
 0x104   : > { %v2158_v37 = vpop.eup %2157  ;;  %2177 = vrcp.f32 %v1719_v42  ;;  %v1804_v48 = vmul.f32 %v2156_v30, %v4115_v32  ;;  %1834 = vst.msk [vmem:[%s3692_s27 + $0x18] sm:$0xff] %vm377_vm0, %v1802_v50 }
 0x105   : > { %v2160_v28 = vpop.eup %2159  ;;  %2179 = vrcp.f32 %v1720_v51  ;;  %v1805_v16 = vmul.f32 %v2158_v37, %v4116_v58  ;;  %1835 = vst.msk [vmem:[%s3692_s27 + $0x20] sm:$0xff] %vm377_vm0, %v1803_v17  ;;  %v4128_v51 = vld [vmem:[#allocation27_spill] sm:$0xff]  ;;  %v4132_v37 = vld [vmem:[#allocation32_spill] sm:$0xff]  ;;  %v4134_v58 = vld [vmem:[#allocation34_spill] sm:$0xff] }
 0x106   : > { %v2162_v57 = vpop.eup %2161  ;;  %2181 = vrcp.f32 %v1721_v34  ;;  %v1806_v22 = vmul.f32 %v2160_v28, %v4117_v10  ;;  %1836 = vst.msk [vmem:[%s3692_s27 + $0x28] sm:$0xff] %vm377_vm0, %v1804_v48  ;;  %v4133_v48 = vld [vmem:[#allocation33_spill] sm:$0xff] }
 0x107   : > { %v2164_v29 = vpop.eup %2163  ;;  %2183 = vrcp.f32 %v1722_v35  ;;  %v1807_v31 = vmul.f32 %v2162_v57, %v4118_v52  ;;  %1837 = vst.msk [vmem:[%s3692_s27 + $0x30] sm:$0xff] %vm377_vm0, %v1805_v16  ;;  %v4131_v35 = vld [vmem:[#allocation31_spill] sm:$0xff] }
 0x108   : > { %v2166_v39 = vpop.eup %2165  ;;  %2185 = vrcp.f32 %v1723_v44  ;;  %v1808_v0 = vmul.f32 %v2164_v29, %v4119_v21  ;;  %1838 = vst.msk [vmem:[%s3692_s27 + $0x38] sm:$0xff] %vm377_vm0, %v1806_v22  ;;  %v4136_v29 = vld [vmem:[#allocation36_spill] sm:$0xff]  ;;  %v4138_v21 = vld [vmem:[#allocation38_spill] sm:$0xff] }
 0x109   : > { %v2168_v26 = vpop.eup %2167  ;;  %2187 = vrcp.f32 %v1724_v7  ;;  %v1809_v19 = vmul.f32 %v2166_v39, %v4120_v14  ;;  %1839 = vst.msk [vmem:[%s3692_s27 + $0x40] sm:$0xff] %vm377_vm0, %v1807_v31  ;;  %v4137_v31 = vld [vmem:[#allocation37_spill] sm:$0xff] }
 0x10a   : > { %v2170_v38 = vpop.eup %2169  ;;  %2189 = vrcp.f32 %v1725_v55  ;;  %v1810_v40 = vmul.f32 %v2168_v26, %v4121_v60  ;;  %1840 = vst.msk [vmem:[%s3692_s27 + $0x48] sm:$0xff] %vm377_vm0, %v1808_v0  ;;  %v4135_v55 = vld [vmem:[#allocation35_spill] sm:$0xff]  ;;  %v4141_v60 = vld [vmem:[#allocation41_spill] sm:$0xff] }
 0x10b   : > { %v2172_v53 = vpop.eup %2171  ;;  %2191 = vrcp.f32 %v1726_v33  ;;  %v1811_v8 = vmul.f32 %v2170_v38, %v4122_v43  ;;  %1841 = vst.msk [vmem:[%s3692_s27 + $0x50] sm:$0xff] %vm377_vm0, %v1809_v19  ;;  %v4140_v38 = vld [vmem:[#allocation40_spill] sm:$0xff] }
 0x10c   : > { %v2174_v5 = vpop.eup %2173  ;;  %2193 = vrcp.f32 %v1727_v24  ;;  %v1812_v23 = vmul.f32 %v2172_v53, %v4123_v62  ;;  %1842 = vst.msk [vmem:[%s3692_s27 + $0x58] sm:$0xff] %vm377_vm0, %v1810_v40 }
 0x10d   : > { %v2176_v41 = vpop.eup %2175  ;;  %2195 = vrcp.f32 %v1728_v25  ;;  %v1813_v36 = vmul.f32 %v2174_v5, %v4124_v56  ;;  %1843 = vst.msk [vmem:[%s3692_s27 + $0x60] sm:$0xff] %vm377_vm0, %v1811_v8  ;;  %v4139_v25 = vld [vmem:[#allocation39_spill] sm:$0xff] }
 0x10e   : > { %v2178_v9 = vpop.eup %2177  ;;  %2197 = vrcp.f32 %v1729_v20  ;;  %v1814_v46 = vmul.f32 %v2176_v41, %v4125_v45  ;;  %1844 = vst.msk [vmem:[%s3692_s27 + $0x68] sm:$0xff] %vm377_vm0, %v1812_v23 }
 0x10f   : > { %v2180_v18 = vpop.eup %2179  ;;  %2199 = vrcp.f32 %v1730_v49  ;;  %v1815_v42 = vmul.f32 %v2178_v9, %v4126_v59  ;;  %1845 = vst.msk [vmem:[%s3692_s27 + $0x70] sm:$0xff] %vm377_vm0, %v1813_v36 }
 0x110   : > { %v2182_v11 = vpop.eup %2181  ;;  %2201 = vrcp.f32 %v1731_v47  ;;  %v1816_v13 = vmul.f32 %v2180_v18, %v4127_v27  ;;  %1846 = vst.msk [vmem:[%s3692_s27 + $0x78] sm:$0xff] %vm377_vm0, %v1814_v46 }
 0x111   : > { %v2184_v54 = vpop.eup %2183  ;;  %2203 = vrcp.f32 %v1732_v6  ;;  %v1817_v3 = vmul.f32 %v2182_v11, %v4128_v51  ;;  %1847 = vst.msk [vmem:[%s3692_s27 + $0x80] sm:$0xff] %vm377_vm0, %v1815_v42 }
 0x112   : > { %v2186_v1 = vpop.eup %2185  ;;  %2205 = vrcp.f32 %v1733_v15  ;;  %v1818_v63 = vmul.f32 %v2184_v54, %v4129_v12  ;;  %1848 = vst.msk [vmem:[%s3692_s27 + $0x88] sm:$0xff] %vm377_vm0, %v1816_v13 }
 0x113   : > { %v2188_v34 = vpop.eup %2187  ;;  %2207 = vrcp.f32 %v1734_v2  ;;  %v1819_v50 = vmul.f32 %v2186_v1, %v4130_v4  ;;  %1849 = vst.msk [vmem:[%s3692_s27 + $0x90] sm:$0xff] %vm377_vm0, %v1817_v3 }
 0x114   : > { %v2190_v30 = vpop.eup %2189  ;;  %v1820_v61 = vmul.f32 %v2188_v34, %v4131_v35  ;;  %1850 = vst.msk [vmem:[%s3692_s27 + $0x98] sm:$0xff] %vm377_vm0, %v1818_v63 }
 0x115   : > { %v2192_v17 = vpop.eup %2191  ;;  %v1821_v44 = vmul.f32 %v2190_v30, %v4132_v37  ;;  %1851 = vst.msk [vmem:[%s3692_s27 + $0xa0] sm:$0xff] %vm377_vm0, %v1819_v50 }
 0x116   : > { %v2194_v32 = vpop.eup %2193  ;;  %v1822_v28 = vmul.f32 %v2192_v17, %v4133_v48  ;;  %1852 = vst.msk [vmem:[%s3692_s27 + $0xa8] sm:$0xff] %vm377_vm0, %v1820_v61 }
 0x117   : > { %v2196_v7 = vpop.eup %2195  ;;  %v1823_v16 = vmul.f32 %v2194_v32, %v4134_v58  ;;  %1853 = vst.msk [vmem:[%s3692_s27 + $0xb0] sm:$0xff] %vm377_vm0, %v1821_v44 }
 0x118   : > { %v2198_v57 = vpop.eup %2197  ;;  %v1824_v10 = vmul.f32 %v2196_v7, %v4135_v55  ;;  %1854 = vst.msk [vmem:[%s3692_s27 + $0xb8] sm:$0xff] %vm377_vm0, %v1822_v28 }
 0x119   : > { %v2200_v22 = vpop.eup %2199  ;;  %v1825_v33 = vmul.f32 %v2198_v57, %v4136_v29  ;;  %1855 = vst.msk [vmem:[%s3692_s27 + $0xc0] sm:$0xff] %vm377_vm0, %v1823_v16 }
 0x11a   : > { %v2202_v52 = vpop.eup %2201  ;;  %v1826_v39 = vmul.f32 %v2200_v22, %v4137_v31  ;;  %1856 = vst.msk [vmem:[%s3692_s27 + $0xc8] sm:$0xff] %vm377_vm0, %v1824_v10 }
 0x11b   : > { %v2204_v24 = vpop.eup %2203  ;;  %v1827_v0 = vmul.f32 %v2202_v52, %v4138_v21  ;;  %1857 = vst.msk [vmem:[%s3692_s27 + $0xd0] sm:$0xff] %vm377_vm0, %v1825_v33 }
 0x11c   : > { %v2206_v26 = vpop.eup %2205  ;;  %v1828_v14 = vmul.f32 %v2204_v24, %v4139_v25  ;;  %1858 = vst.msk [vmem:[%s3692_s27 + $0xd8] sm:$0xff] %vm377_vm0, %v1826_v39 }
 0x11d   : > { %v2208_v19 = vpop.eup %2207  ;;  %v1829_v20 = vmul.f32 %v2206_v26, %v4140_v38  ;;  %1859 = vst.msk [vmem:[%s3692_s27 + $0xe0] sm:$0xff] %vm377_vm0, %v1827_v0 }
 0x11e   : > { %v1830_v40 = vmul.f32 %v2208_v19, %v4141_v60  ;;  %1860 = vst.msk [vmem:[%s3692_s27 + $0xe8] sm:$0xff] %vm377_vm0, %v1828_v14 }
 0x11f   : > { %1861 = vst.msk [vmem:[%s3692_s27 + $0xf0] sm:$0xff] %vm377_vm0, %v1829_v20 }
 0x120   : > { %1862 = vst.msk [vmem:[%s3692_s27 + $0xf8] sm:$0xff] %vm377_vm0, %v1830_v40 }
 0x121 PF: > { %s16_s23 = sadd.s32 1, %s2231_s23   ;;  %s4142_s21 = smov %s2227_s22 }
 0x122   : > { %p13_p5 = scmp.ge.s32.totalorder %s16_s23, 4   ;;  %s4143_s22 = smov %s4145_s24 }
 0x124   :  { %15 = sbr.rel (!%p13_p5) target bundleno = 2 (0x2), region = 157 }

</bundles_post_ra>
